<compile_context>
chip_gen: v7x
topology: tpu7x:2x2x1
jax: 0.10.0
libtpu: 0.0.40
codegen_flags: <defaults>
</compile_context>

<pallas_src>
import jax
import jax.numpy as jnp
from jax import lax
from jax.experimental import pallas as pl
from jax.experimental.pallas import tpu as pltpu

LANES = 128                      # pad all output-channel dims to 128 lanes
VMEM_LIMIT = 32 * 1024 * 1024    # explicit scoped-VMEM budget, safe on v5e/v6e/v7x


def _round_up(x, m):
    return (x + m - 1) // m * m


def _pick_tile(m, target=256):
    """Row-tile size: multiple of 8 (sublane), capped at `target`."""
    if m <= target:
        return _round_up(m, 8)
    return target


# ----------------------------------------------------------------------------
# Pallas kernels
# ----------------------------------------------------------------------------
def _conv_relu_pool_kernel(c00_ref, c01_ref, c10_ref, c11_ref, w_ref, b_ref, o_ref):
    """Fused conv (as matmul) + bias + ReLU + 2x2/2 maxpool.

    The four c*_refs are im2col row-tiles for the four (dy,dx) positions of
    each 2x2 pooling window; maxpool(relu(conv)+b) == relu(max_q(conv_q)+b)
    since the bias is shared and ReLU is monotone.
    """
    w = w_ref[...]                                   # (K, 128) bf16, VMEM-resident
    a = jnp.dot(c00_ref[...], w, preferred_element_type=jnp.float32)
    a = jnp.maximum(a, jnp.dot(c01_ref[...], w, preferred_element_type=jnp.float32))
    a = jnp.maximum(a, jnp.dot(c10_ref[...], w, preferred_element_type=jnp.float32))
    a = jnp.maximum(a, jnp.dot(c11_ref[...], w, preferred_element_type=jnp.float32))
    o_ref[...] = jnp.maximum(a + b_ref[...], 0.0).astype(o_ref.dtype)


def _fc_head_kernel(x_ref, w1_ref, b1_ref, w2_ref, b2_ref, w3_ref, b3_ref, o_ref):
    """fc1+ReLU -> fc2+ReLU -> fc3 in one launch; all weights resident in VMEM."""
    h = jnp.dot(x_ref[...], w1_ref[...], preferred_element_type=jnp.float32) + b1_ref[...]
    h = jnp.maximum(h, 0.0).astype(jnp.bfloat16)
    h = jnp.dot(h, w2_ref[...], preferred_element_type=jnp.float32) + b2_ref[...]
    h = jnp.maximum(h, 0.0).astype(jnp.bfloat16)
    o_ref[...] = jnp.dot(h, w3_ref[...], preferred_element_type=jnp.float32) + b3_ref[...]


# ----------------------------------------------------------------------------
# Wrappers around pallas_call
# ----------------------------------------------------------------------------
def _im2col_pool_quadrants(x, kh, kw):
    """x: (B, H, W, C) NHWC (bf16).  Returns 4 im2col matrices, one per 2x2-pool
    offset (dy,dx), each (B*POH*POW, kh*kw*C) with K ordered (ki, kj, c)."""
    B, H, W, C = x.shape
    OH, OW = H - kh + 1, W - kw + 1
    POH, POW = OH // 2, OW // 2
    quads = []
    for dy in range(2):
        for dx in range(2):
            patches = []
            for ki in range(kh):
                for kj in range(kw):
                    s0, s1 = dy + ki, dx + kj
                    sl = lax.slice(
                        x,
                        (0, s0, s1, 0),
                        (B, s0 + 2 * (POH - 1) + 1, s1 + 2 * (POW - 1) + 1, C),
                        (1, 2, 2, 1),
                    )                                  # (B, POH, POW, C)
                    patches.append(sl)
            q = jnp.stack(patches, axis=-2)            # (B, POH, POW, kh*kw, C)
            quads.append(q.reshape(B * POH * POW, kh * kw * C))
    return quads, (POH, POW)


def conv_relu_pool(x, wk, bk, kh, kw, n_out, tm_target=256):
    """x: (B,H,W,C) bf16 NHWC; wk: (kh*kw*C, 128) bf16; bk: (1,128) f32.
    Returns pooled-relu-conv output (B, POH, POW, n_out) bf16."""
    B = x.shape[0]
    quads, (POH, POW) = _im2col_pool_quadrants(x, kh, kw)
    M, K = quads[0].shape
    TM = _pick_tile(M, tm_target)
    Mpad = _round_up(M, TM)
    if Mpad != M:
        quads = [jnp.pad(q, ((0, Mpad - M), (0, 0))) for q in quads]
    grid = (Mpad // TM,)
    out = pl.pallas_call(
        _conv_relu_pool_kernel,
        out_shape=jax.ShapeDtypeStruct((Mpad, LANES), jnp.bfloat16),
        grid=grid,
        in_specs=[pl.BlockSpec((TM, K), lambda i: (i, 0)) for _ in range(4)]
        + [
            pl.BlockSpec((K, LANES), lambda i: (0, 0)),
            pl.BlockSpec((1, LANES), lambda i: (0, 0)),
        ],
        out_specs=pl.BlockSpec((TM, LANES), lambda i: (i, 0)),
        compiler_params=pltpu.CompilerParams(
            dimension_semantics=("parallel",),
            vmem_limit_bytes=VMEM_LIMIT,
        ),
    )(*quads, wk, bk)
    return out[:M, :n_out].reshape(B, POH, POW, n_out)


def fc_head(xf, w1, b1, w2, b2, w3, b3, n_out, tb_target=256):
    """xf: (B, 400) bf16.  Weights pre-permuted/padded to 128 lanes, bf16.
    Returns (B, n_out) f32 logits."""
    B, K = xf.shape
    TB = _pick_tile(B, tb_target)
    Bpad = _round_up(B, TB)
    if Bpad != B:
        xf = jnp.pad(xf, ((0, Bpad - B), (0, 0)))
    grid = (Bpad // TB,)
    out = pl.pallas_call(
        _fc_head_kernel,
        out_shape=jax.ShapeDtypeStruct((Bpad, LANES), jnp.float32),
        grid=grid,
        in_specs=[
            pl.BlockSpec((TB, K), lambda i: (i, 0)),
            pl.BlockSpec((K, LANES), lambda i: (0, 0)),
            pl.BlockSpec((1, LANES), lambda i: (0, 0)),
            pl.BlockSpec((LANES, LANES), lambda i: (0, 0)),
            pl.BlockSpec((1, LANES), lambda i: (0, 0)),
            pl.BlockSpec((LANES, LANES), lambda i: (0, 0)),
            pl.BlockSpec((1, LANES), lambda i: (0, 0)),
        ],
        out_specs=pl.BlockSpec((TB, LANES), lambda i: (i, 0)),
        compiler_params=pltpu.CompilerParams(
            dimension_semantics=("parallel",),
            vmem_limit_bytes=VMEM_LIMIT,
        ),
    )(xf, w1, b1, w2, b2, w3, b3)
    return out[:B, :n_out]


# ----------------------------------------------------------------------------
# Parameter init (torch layout) + one-time re-layout for the kernels
# ----------------------------------------------------------------------------
def _uniform(key, shape, bound):
    return jax.random.uniform(key, shape, jnp.float32, -bound, bound)


def init_params(seed=0):
    keys = jax.random.split(jax.random.PRNGKey(seed), 10)
    p = {}
    b1 = 1.0 / (3 * 5 * 5) ** 0.5
    p["conv1_w"] = _uniform(keys[0], (6, 3, 5, 5), b1)
    p["conv1_b"] = _uniform(keys[1], (6,), b1)
    b2 = 1.0 / (6 * 5 * 5) ** 0.5
    p["conv2_w"] = _uniform(keys[2], (16, 6, 5, 5), b2)
    p["conv2_b"] = _uniform(keys[3], (16,), b2)
    b3 = 1.0 / 400 ** 0.5
    p["fc1_w"] = _uniform(keys[4], (120, 400), b3)
    p["fc1_b"] = _uniform(keys[5], (120,), b3)
    b4 = 1.0 / 120 ** 0.5
    p["fc2_w"] = _uniform(keys[6], (84, 120), b4)
    p["fc2_b"] = _uniform(keys[7], (84,), b4)
    b5 = 1.0 / 84 ** 0.5
    p["fc3_w"] = _uniform(keys[8], (10, 84), b5)
    p["fc3_b"] = _uniform(keys[9], (10,), b5)
    return p


def _pad2(a, rows, cols):
    r, c = a.shape
    return jnp.pad(a, ((0, rows - r), (0, cols - c)))


def _pad_bias(b):
    return jnp.pad(b, (0, LANES - b.shape[0])).reshape(1, LANES).astype(jnp.float32)


def prepare_params(p):
    """One-time re-layout of torch-layout params into kernel-ready arrays
    (runs outside jit: no per-step transposes inside the forward)."""
    q = {}
    # conv1: (6,3,5,5) -> (kh,kw,C,O) -> (75,6) -> pad cols to 128, bf16
    w = jnp.transpose(p["conv1_w"], (2, 3, 1, 0)).reshape(75, 6)
    q["conv1_w"] = _pad2(w, 75, LANES).astype(jnp.bfloat16)
    q["conv1_b"] = _pad_bias(p["conv1_b"])
    # conv2: (16,6,5,5) -> (150,16) -> pad cols to 128
    w = jnp.transpose(p["conv2_w"], (2, 3, 1, 0)).reshape(150, 16)
    q["conv2_w"] = _pad2(w, 150, LANES).astype(jnp.bfloat16)
    q["conv2_b"] = _pad_bias(p["conv2_b"])
    # fc1: permute input dim from torch's (c,h,w) flatten to our (h,w,c) flatten
    w = p["fc1_w"].reshape(120, 16, 5, 5).transpose(2, 3, 1, 0).reshape(400, 120)
    q["fc1_w"] = _pad2(w, 400, LANES).astype(jnp.bfloat16)
    q["fc1_b"] = _pad_bias(p["fc1_b"])
    # fc2: (84,120) -> (120,84) -> pad to (128,128)
    q["fc2_w"] = _pad2(p["fc2_w"].T, LANES, LANES).astype(jnp.bfloat16)
    q["fc2_b"] = _pad_bias(p["fc2_b"])
    # fc3: (10,84) -> (84,10) -> pad to (128,128)
    q["fc3_w"] = _pad2(p["fc3_w"].T, LANES, LANES).astype(jnp.bfloat16)
    q["fc3_b"] = _pad_bias(p["fc3_b"])
    return q


# ----------------------------------------------------------------------------
# Forward pass (mirrors Net.forward)
# ----------------------------------------------------------------------------
@jax.jit
def net_forward(x, params):
    # x: (B, 3, 32, 32) NCHW float32 (PyTorch boundary convention)
    x = jnp.transpose(x, (0, 2, 3, 1)).astype(jnp.bfloat16)            # NHWC once
    x = conv_relu_pool(x, params["conv1_w"], params["conv1_b"], 5, 5, 6)   # (B,14,14,6)
    x = conv_relu_pool(x, params["conv2_w"], params["conv2_b"], 5, 5, 16)  # (B,5,5,16)
    B = x.shape[0]
    xf = x.reshape(B, 5 * 5 * 16)          # (h,w,c) order; fc1 weight is permuted to match
    return fc_head(xf, params["fc1_w"], params["fc1_b"],
                   params["fc2_w"], params["fc2_b"],
                   params["fc3_w"], params["fc3_b"], n_out=10)          # (B,10) f32


if __name__ == "__main__":
    x = jax.random.normal(jax.random.PRNGKey(0), (2, 3, 32, 32), dtype=jnp.float32)
    raw = init_params(seed=0)
    params = prepare_params(raw)
    out = jax.block_until_ready(net_forward(x, params))
    assert out.shape == (2, 10), out.shape
    assert bool(jnp.isfinite(out).all())
    print("KERNEL_OK")
</pallas_src>

<mosaic_0001>
module attributes {stable_mosaic.version = 11 : i64} {
  func.func @_conv_relu_pool_kernel(%arg0: i32, %arg1: memref<256x75xbf16, #tpu.memory_space<vmem>>, %arg2: memref<256x75xbf16, #tpu.memory_space<vmem>>, %arg3: memref<256x75xbf16, #tpu.memory_space<vmem>>, %arg4: memref<256x75xbf16, #tpu.memory_space<vmem>>, %arg5: memref<75x128xbf16, #tpu.memory_space<vmem>>, %arg6: memref<1x128xf32, #tpu.memory_space<vmem>>, %arg7: memref<256x128xbf16, #tpu.memory_space<vmem>>) attributes {dimension_semantics = [#tpu.dimension_semantics<parallel>], iteration_bounds = array<i64: 2>, scalar_prefetch = 0 : i64, scratch_operands = 0 : i64, tpu.core_type = #tpu.core_type<tc>, window_params = [{transform_indices = @transform_0, window_bounds = array<i64: 256, 75>}, {transform_indices = @transform_1, window_bounds = array<i64: 256, 75>}, {transform_indices = @transform_2, window_bounds = array<i64: 256, 75>}, {transform_indices = @transform_3, window_bounds = array<i64: 256, 75>}, {pipeline_mode = #tpu.pipeline_mode<synchronous>, transform_indices = @transform_4, window_bounds = array<i64: 75, 128>}, {pipeline_mode = #tpu.pipeline_mode<synchronous>, transform_indices = @transform_5, window_bounds = array<i64: 1, 128>}, {transform_indices = @transform_6, window_bounds = array<i64: 256, 128>}]} {
    %c0 = arith.constant 0 : index
    %c0_0 = arith.constant 0 : index
    %0 = vector.load %arg5[%c0, %c0_0] : memref<75x128xbf16, #tpu.memory_space<vmem>>, vector<75x128xbf16>
    %c0_1 = arith.constant 0 : index
    %c0_2 = arith.constant 0 : index
    %1 = vector.load %arg1[%c0_1, %c0_2] : memref<256x75xbf16, #tpu.memory_space<vmem>>, vector<256x75xbf16>
    %cst = arith.constant dense<0.000000e+00> : vector<256x128xf32>
    %2 = tpu.matmul %1, %0, %cst {dimension_numbers = #tpu.dot_dimension_numbers<[1], [0], [0], [1], [0, 0, 1, 1], [], []>} : vector<256x75xbf16>, vector<75x128xbf16>, vector<256x128xf32> -> vector<256x128xf32>
    %c0_3 = arith.constant 0 : index
    %c0_4 = arith.constant 0 : index
    %3 = vector.load %arg2[%c0_3, %c0_4] : memref<256x75xbf16, #tpu.memory_space<vmem>>, vector<256x75xbf16>
    %cst_5 = arith.constant dense<0.000000e+00> : vector<256x128xf32>
    %4 = tpu.matmul %3, %0, %cst_5 {dimension_numbers = #tpu.dot_dimension_numbers<[1], [0], [0], [1], [0, 0, 1, 1], [], []>} : vector<256x75xbf16>, vector<75x128xbf16>, vector<256x128xf32> -> vector<256x128xf32>
    %5 = arith.maximumf %2, %4 : vector<256x128xf32>
    %c0_6 = arith.constant 0 : index
    %c0_7 = arith.constant 0 : index
    %6 = vector.load %arg3[%c0_6, %c0_7] : memref<256x75xbf16, #tpu.memory_space<vmem>>, vector<256x75xbf16>
    %cst_8 = arith.constant dense<0.000000e+00> : vector<256x128xf32>
    %7 = tpu.matmul %6, %0, %cst_8 {dimension_numbers = #tpu.dot_dimension_numbers<[1], [0], [0], [1], [0, 0, 1, 1], [], []>} : vector<256x75xbf16>, vector<75x128xbf16>, vector<256x128xf32> -> vector<256x128xf32>
    %8 = arith.maximumf %5, %7 : vector<256x128xf32>
    %c0_9 = arith.constant 0 : index
    %c0_10 = arith.constant 0 : index
    %9 = vector.load %arg4[%c0_9, %c0_10] : memref<256x75xbf16, #tpu.memory_space<vmem>>, vector<256x75xbf16>
    %cst_11 = arith.constant dense<0.000000e+00> : vector<256x128xf32>
    %10 = tpu.matmul %9, %0, %cst_11 {dimension_numbers = #tpu.dot_dimension_numbers<[1], [0], [0], [1], [0, 0, 1, 1], [], []>} : vector<256x75xbf16>, vector<75x128xbf16>, vector<256x128xf32> -> vector<256x128xf32>
    %11 = arith.maximumf %8, %10 : vector<256x128xf32>
    %c0_12 = arith.constant 0 : index
    %c0_13 = arith.constant 0 : index
    %12 = vector.load %arg6[%c0_12, %c0_13] : memref<1x128xf32, #tpu.memory_space<vmem>>, vector<1x128xf32>
    %13 = vector.broadcast %12 : vector<1x128xf32> to vector<256x128xf32>
    %14 = arith.addf %11, %13 : vector<256x128xf32>
    %cst_14 = arith.constant 0.000000e+00 : f32
    %15 = vector.broadcast %cst_14 : f32 to vector<256x128xf32>
    %16 = arith.maximumf %14, %15 : vector<256x128xf32>
    %17 = arith.truncf %16 : vector<256x128xf32> to vector<256x128xbf16>
    %c0_15 = arith.constant 0 : index
    %c0_16 = arith.constant 0 : index
    %18 = vector.load %arg7[%c0_15, %c0_16] : memref<256x128xbf16, #tpu.memory_space<vmem>>, vector<256x128xbf16>
    tpu.vector_store %arg7[%c0_15, %c0_16], %17 {strides = array<i32>} : memref<256x128xbf16, #tpu.memory_space<vmem>>, vector<256x128xbf16>,
    return
  }
  func.func @transform_0(%arg0: i32) -> (i32, i32) {
    %c0_i32 = arith.constant 0 : i32
    %c0_i32_0 = arith.constant 0 : i32
    return %arg0, %c0_i32 : i32, i32
  }
  func.func @transform_1(%arg0: i32) -> (i32, i32) {
    %c0_i32 = arith.constant 0 : i32
    %c0_i32_0 = arith.constant 0 : i32
    return %arg0, %c0_i32 : i32, i32
  }
  func.func @transform_2(%arg0: i32) -> (i32, i32) {
    %c0_i32 = arith.constant 0 : i32
    %c0_i32_0 = arith.constant 0 : i32
    return %arg0, %c0_i32 : i32, i32
  }
  func.func @transform_3(%arg0: i32) -> (i32, i32) {
    %c0_i32 = arith.constant 0 : i32
    %c0_i32_0 = arith.constant 0 : i32
    return %arg0, %c0_i32 : i32, i32
  }
  func.func @transform_4(%arg0: i32) -> (i32, i32) {
    %c0_i32 = arith.constant 0 : i32
    %c0_i32_0 = arith.constant 0 : i32
    %c0_i32_1 = arith.constant 0 : i32
    return %c0_i32, %c0_i32_0 : i32, i32
  }
  func.func @transform_5(%arg0: i32) -> (i32, i32) {
    %c0_i32 = arith.constant 0 : i32
    %c0_i32_0 = arith.constant 0 : i32
    %c0_i32_1 = arith.constant 0 : i32
    return %c0_i32, %c0_i32_0 : i32, i32
  }
  func.func @transform_6(%arg0: i32) -> (i32, i32) {
    %c0_i32 = arith.constant 0 : i32
    %c0_i32_0 = arith.constant 0 : i32
    return %arg0, %c0_i32 : i32, i32
  }
}

module attributes {stable_mosaic.version = 11 : i64} {
  func.func @_conv_relu_pool_kernel(%arg0: i32, %arg1: memref<56x150xbf16, #tpu.memory_space<vmem>>, %arg2: memref<56x150xbf16, #tpu.memory_space<vmem>>, %arg3: memref<56x150xbf16, #tpu.memory_space<vmem>>, %arg4: memref<56x150xbf16, #tpu.memory_space<vmem>>, %arg5: memref<150x128xbf16, #tpu.memory_space<vmem>>, %arg6: memref<1x128xf32, #tpu.memory_space<vmem>>, %arg7: memref<56x128xbf16, #tpu.memory_space<vmem>>) attributes {dimension_semantics = [#tpu.dimension_semantics<parallel>], iteration_bounds = array<i64: 1>, scalar_prefetch = 0 : i64, scratch_operands = 0 : i64, tpu.core_type = #tpu.core_type<tc>, window_params = [{transform_indices = @transform_0, window_bounds = array<i64: 56, 150>}, {transform_indices = @transform_1, window_bounds = array<i64: 56, 150>}, {transform_indices = @transform_2, window_bounds = array<i64: 56, 150>}, {transform_indices = @transform_3, window_bounds = array<i64: 56, 150>}, {pipeline_mode = #tpu.pipeline_mode<synchronous>, transform_indices = @transform_4, window_bounds = array<i64: 150, 128>}, {pipeline_mode = #tpu.pipeline_mode<synchronous>, transform_indices = @transform_5, window_bounds = array<i64: 1, 128>}, {transform_indices = @transform_6, window_bounds = array<i64: 56, 128>}]} {
    %c0 = arith.constant 0 : index
    %c0_0 = arith.constant 0 : index
    %0 = vector.load %arg5[%c0, %c0_0] : memref<150x128xbf16, #tpu.memory_space<vmem>>, vector<150x128xbf16>
    %c0_1 = arith.constant 0 : index
    %c0_2 = arith.constant 0 : index
    %1 = vector.load %arg1[%c0_1, %c0_2] : memref<56x150xbf16, #tpu.memory_space<vmem>>, vector<56x150xbf16>
    %cst = arith.constant dense<0.000000e+00> : vector<56x128xf32>
    %2 = tpu.matmul %1, %0, %cst {dimension_numbers = #tpu.dot_dimension_numbers<[1], [0], [0], [1], [0, 0, 1, 1], [], []>} : vector<56x150xbf16>, vector<150x128xbf16>, vector<56x128xf32> -> vector<56x128xf32>
    %c0_3 = arith.constant 0 : index
    %c0_4 = arith.constant 0 : index
    %3 = vector.load %arg2[%c0_3, %c0_4] : memref<56x150xbf16, #tpu.memory_space<vmem>>, vector<56x150xbf16>
    %cst_5 = arith.constant dense<0.000000e+00> : vector<56x128xf32>
    %4 = tpu.matmul %3, %0, %cst_5 {dimension_numbers = #tpu.dot_dimension_numbers<[1], [0], [0], [1], [0, 0, 1, 1], [], []>} : vector<56x150xbf16>, vector<150x128xbf16>, vector<56x128xf32> -> vector<56x128xf32>
    %5 = arith.maximumf %2, %4 : vector<56x128xf32>
    %c0_6 = arith.constant 0 : index
    %c0_7 = arith.constant 0 : index
    %6 = vector.load %arg3[%c0_6, %c0_7] : memref<56x150xbf16, #tpu.memory_space<vmem>>, vector<56x150xbf16>
    %cst_8 = arith.constant dense<0.000000e+00> : vector<56x128xf32>
    %7 = tpu.matmul %6, %0, %cst_8 {dimension_numbers = #tpu.dot_dimension_numbers<[1], [0], [0], [1], [0, 0, 1, 1], [], []>} : vector<56x150xbf16>, vector<150x128xbf16>, vector<56x128xf32> -> vector<56x128xf32>
    %8 = arith.maximumf %5, %7 : vector<56x128xf32>
    %c0_9 = arith.constant 0 : index
    %c0_10 = arith.constant 0 : index
    %9 = vector.load %arg4[%c0_9, %c0_10] : memref<56x150xbf16, #tpu.memory_space<vmem>>, vector<56x150xbf16>
    %cst_11 = arith.constant dense<0.000000e+00> : vector<56x128xf32>
    %10 = tpu.matmul %9, %0, %cst_11 {dimension_numbers = #tpu.dot_dimension_numbers<[1], [0], [0], [1], [0, 0, 1, 1], [], []>} : vector<56x150xbf16>, vector<150x128xbf16>, vector<56x128xf32> -> vector<56x128xf32>
    %11 = arith.maximumf %8, %10 : vector<56x128xf32>
    %c0_12 = arith.constant 0 : index
    %c0_13 = arith.constant 0 : index
    %12 = vector.load %arg6[%c0_12, %c0_13] : memref<1x128xf32, #tpu.memory_space<vmem>>, vector<1x128xf32>
    %13 = vector.broadcast %12 : vector<1x128xf32> to vector<56x128xf32>
    %14 = arith.addf %11, %13 : vector<56x128xf32>
    %cst_14 = arith.constant 0.000000e+00 : f32
    %15 = vector.broadcast %cst_14 : f32 to vector<56x128xf32>
    %16 = arith.maximumf %14, %15 : vector<56x128xf32>
    %17 = arith.truncf %16 : vector<56x128xf32> to vector<56x128xbf16>
    %c0_15 = arith.constant 0 : index
    %c0_16 = arith.constant 0 : index
    %18 = vector.load %arg7[%c0_15, %c0_16] : memref<56x128xbf16, #tpu.memory_space<vmem>>, vector<56x128xbf16>
    tpu.vector_store %arg7[%c0_15, %c0_16], %17 {strides = array<i32>} : memref<56x128xbf16, #tpu.memory_space<vmem>>, vector<56x128xbf16>,
    return
  }
  func.func @transform_0(%arg0: i32) -> (i32, i32) {
    %c0_i32 = arith.constant 0 : i32
    %c0_i32_0 = arith.constant 0 : i32
    return %arg0, %c0_i32 : i32, i32
  }
  func.func @transform_1(%arg0: i32) -> (i32, i32) {
    %c0_i32 = arith.constant 0 : i32
    %c0_i32_0 = arith.constant 0 : i32
    return %arg0, %c0_i32 : i32, i32
  }
  func.func @transform_2(%arg0: i32) -> (i32, i32) {
    %c0_i32 = arith.constant 0 : i32
    %c0_i32_0 = arith.constant 0 : i32
    return %arg0, %c0_i32 : i32, i32
  }
  func.func @transform_3(%arg0: i32) -> (i32, i32) {
    %c0_i32 = arith.constant 0 : i32
    %c0_i32_0 = arith.constant 0 : i32
    return %arg0, %c0_i32 : i32, i32
  }
  func.func @transform_4(%arg0: i32) -> (i32, i32) {
    %c0_i32 = arith.constant 0 : i32
    %c0_i32_0 = arith.constant 0 : i32
    %c0_i32_1 = arith.constant 0 : i32
    return %c0_i32, %c0_i32_0 : i32, i32
  }
  func.func @transform_5(%arg0: i32) -> (i32, i32) {
    %c0_i32 = arith.constant 0 : i32
    %c0_i32_0 = arith.constant 0 : i32
    %c0_i32_1 = arith.constant 0 : i32
    return %c0_i32, %c0_i32_0 : i32, i32
  }
  func.func @transform_6(%arg0: i32) -> (i32, i32) {
    %c0_i32 = arith.constant 0 : i32
    %c0_i32_0 = arith.constant 0 : i32
    return %arg0, %c0_i32 : i32, i32
  }
}

module attributes {stable_mosaic.version = 11 : i64} {
  func.func @_fc_head_kernel(%arg0: i32, %arg1: memref<8x400xbf16, #tpu.memory_space<vmem>>, %arg2: memref<400x128xbf16, #tpu.memory_space<vmem>>, %arg3: memref<1x128xf32, #tpu.memory_space<vmem>>, %arg4: memref<128x128xbf16, #tpu.memory_space<vmem>>, %arg5: memref<1x128xf32, #tpu.memory_space<vmem>>, %arg6: memref<128x128xbf16, #tpu.memory_space<vmem>>, %arg7: memref<1x128xf32, #tpu.memory_space<vmem>>, %arg8: memref<8x128xf32, #tpu.memory_space<vmem>>) attributes {dimension_semantics = [#tpu.dimension_semantics<parallel>], iteration_bounds = array<i64: 1>, scalar_prefetch = 0 : i64, scratch_operands = 0 : i64, tpu.core_type = #tpu.core_type<tc>, window_params = [{transform_indices = @transform_0, window_bounds = array<i64: 8, 400>}, {pipeline_mode = #tpu.pipeline_mode<synchronous>, transform_indices = @transform_1, window_bounds = array<i64: 400, 128>}, {pipeline_mode = #tpu.pipeline_mode<synchronous>, transform_indices = @transform_2, window_bounds = array<i64: 1, 128>}, {pipeline_mode = #tpu.pipeline_mode<synchronous>, transform_indices = @transform_3, window_bounds = array<i64: 128, 128>}, {pipeline_mode = #tpu.pipeline_mode<synchronous>, transform_indices = @transform_4, window_bounds = array<i64: 1, 128>}, {pipeline_mode = #tpu.pipeline_mode<synchronous>, transform_indices = @transform_5, window_bounds = array<i64: 128, 128>}, {pipeline_mode = #tpu.pipeline_mode<synchronous>, transform_indices = @transform_6, window_bounds = array<i64: 1, 128>}, {transform_indices = @transform_7, window_bounds = array<i64: 8, 128>}]} {
    %c0 = arith.constant 0 : index
    %c0_0 = arith.constant 0 : index
    %0 = vector.load %arg1[%c0, %c0_0] : memref<8x400xbf16, #tpu.memory_space<vmem>>, vector<8x400xbf16>
    %c0_1 = arith.constant 0 : index
    %c0_2 = arith.constant 0 : index
    %1 = vector.load %arg2[%c0_1, %c0_2] : memref<400x128xbf16, #tpu.memory_space<vmem>>, vector<400x128xbf16>
    %cst = arith.constant dense<0.000000e+00> : vector<8x128xf32>
    %2 = tpu.matmul %0, %1, %cst {dimension_numbers = #tpu.dot_dimension_numbers<[1], [0], [0], [1], [0, 0, 1, 1], [], []>} : vector<8x400xbf16>, vector<400x128xbf16>, vector<8x128xf32> -> vector<8x128xf32>
    %c0_3 = arith.constant 0 : index
    %c0_4 = arith.constant 0 : index
    %3 = vector.load %arg3[%c0_3, %c0_4] : memref<1x128xf32, #tpu.memory_space<vmem>>, vector<1x128xf32>
    %4 = vector.broadcast %3 : vector<1x128xf32> to vector<8x128xf32>
    %5 = arith.addf %2, %4 : vector<8x128xf32>
    %cst_5 = arith.constant 0.000000e+00 : f32
    %6 = vector.broadcast %cst_5 : f32 to vector<8x128xf32>
    %7 = arith.maximumf %5, %6 : vector<8x128xf32>
    %8 = arith.truncf %7 : vector<8x128xf32> to vector<8x128xbf16>
    %c0_6 = arith.constant 0 : index
    %c0_7 = arith.constant 0 : index
    %9 = vector.load %arg4[%c0_6, %c0_7] : memref<128x128xbf16, #tpu.memory_space<vmem>>, vector<128x128xbf16>
    %cst_8 = arith.constant dense<0.000000e+00> : vector<8x128xf32>
    %10 = tpu.matmul %8, %9, %cst_8 {dimension_numbers = #tpu.dot_dimension_numbers<[1], [0], [0], [1], [0, 0, 1, 1], [], []>} : vector<8x128xbf16>, vector<128x128xbf16>, vector<8x128xf32> -> vector<8x128xf32>
    %c0_9 = arith.constant 0 : index
    %c0_10 = arith.constant 0 : index
    %11 = vector.load %arg5[%c0_9, %c0_10] : memref<1x128xf32, #tpu.memory_space<vmem>>, vector<1x128xf32>
    %12 = vector.broadcast %11 : vector<1x128xf32> to vector<8x128xf32>
    %13 = arith.addf %10, %12 : vector<8x128xf32>
    %cst_11 = arith.constant 0.000000e+00 : f32
    %14 = vector.broadcast %cst_11 : f32 to vector<8x128xf32>
    %15 = arith.maximumf %13, %14 : vector<8x128xf32>
    %16 = arith.truncf %15 : vector<8x128xf32> to vector<8x128xbf16>
    %c0_12 = arith.constant 0 : index
    %c0_13 = arith.constant 0 : index
    %17 = vector.load %arg6[%c0_12, %c0_13] : memref<128x128xbf16, #tpu.memory_space<vmem>>, vector<128x128xbf16>
    %cst_14 = arith.constant dense<0.000000e+00> : vector<8x128xf32>
    %18 = tpu.matmul %16, %17, %cst_14 {dimension_numbers = #tpu.dot_dimension_numbers<[1], [0], [0], [1], [0, 0, 1, 1], [], []>} : vector<8x128xbf16>, vector<128x128xbf16>, vector<8x128xf32> -> vector<8x128xf32>
    %c0_15 = arith.constant 0 : index
    %c0_16 = arith.constant 0 : index
    %19 = vector.load %arg7[%c0_15, %c0_16] : memref<1x128xf32, #tpu.memory_space<vmem>>, vector<1x128xf32>
    %20 = vector.broadcast %19 : vector<1x128xf32> to vector<8x128xf32>
    %21 = arith.addf %18, %20 : vector<8x128xf32>
    %c0_17 = arith.constant 0 : index
    %c0_18 = arith.constant 0 : index
    %22 = vector.load %arg8[%c0_17, %c0_18] : memref<8x128xf32, #tpu.memory_space<vmem>>, vector<8x128xf32>
    tpu.vector_store %arg8[%c0_17, %c0_18], %21 {strides = array<i32>} : memref<8x128xf32, #tpu.memory_space<vmem>>, vector<8x128xf32>,
    return
  }
  func.func @transform_0(%arg0: i32) -> (i32, i32) {
    %c0_i32 = arith.constant 0 : i32
    %c0_i32_0 = arith.constant 0 : i32
    return %arg0, %c0_i32 : i32, i32
  }
  func.func @transform_1(%arg0: i32) -> (i32, i32) {
    %c0_i32 = arith.constant 0 : i32
    %c0_i32_0 = arith.constant 0 : i32
    %c0_i32_1 = arith.constant 0 : i32
    return %c0_i32, %c0_i32_0 : i32, i32
  }
  func.func @transform_2(%arg0: i32) -> (i32, i32) {
    %c0_i32 = arith.constant 0 : i32
    %c0_i32_0 = arith.constant 0 : i32
    %c0_i32_1 = arith.constant 0 : i32
    return %c0_i32, %c0_i32_0 : i32, i32
  }
  func.func @transform_3(%arg0: i32) -> (i32, i32) {
    %c0_i32 = arith.constant 0 : i32
    %c0_i32_0 = arith.constant 0 : i32
    %c0_i32_1 = arith.constant 0 : i32
    return %c0_i32, %c0_i32_0 : i32, i32
  }
  func.func @transform_4(%arg0: i32) -> (i32, i32) {
    %c0_i32 = arith.constant 0 : i32
    %c0_i32_0 = arith.constant 0 : i32
    %c0_i32_1 = arith.constant 0 : i32
    return %c0_i32, %c0_i32_0 : i32, i32
  }
  func.func @transform_5(%arg0: i32) -> (i32, i32) {
    %c0_i32 = arith.constant 0 : i32
    %c0_i32_0 = arith.constant 0 : i32
    %c0_i32_1 = arith.constant 0 : i32
    return %c0_i32, %c0_i32_0 : i32, i32
  }
  func.func @transform_6(%arg0: i32) -> (i32, i32) {
    %c0_i32 = arith.constant 0 : i32
    %c0_i32_0 = arith.constant 0 : i32
    %c0_i32_1 = arith.constant 0 : i32
    return %c0_i32, %c0_i32_0 : i32, i32
  }
  func.func @transform_7(%arg0: i32) -> (i32, i32) {
    %c0_i32 = arith.constant 0 : i32
    %c0_i32_0 = arith.constant 0 : i32
    return %arg0, %c0_i32 : i32, i32
  }
}

</mosaic_0001>

<bundles_post_ra>
// kernel: net_forward.3
= control target key start
LH: loop header
LB: loop body
LE: loop exit
PB: predicated region body
PF: predicated region fallthrough
CT: control target
= control target key end

     0   :  { %s2756_s21 = smov 0   ;;  %s3283_s0 = inlined_call_operand.vmem [shape: bf16[512,75], index: 0, kind: input, shape index: {}]   ;;  %s3284_s1 = inlined_call_operand.vmem [shape: bf16[512,75], index: 1, kind: input, shape index: {}]   ;;  %s3285_s2 = inlined_call_operand.vmem [shape: bf16[512,75], index: 2, kind: input, shape index: {}]   ;;  %s3286_s3 = inlined_call_operand.vmem [shape: bf16[512,75], index: 3, kind: input, shape index: {}]   ;;  %s3287_s4 = inlined_call_operand.vmem [shape: bf16[75,128], index: 4, kind: input, shape index: {}]   ;;  %s3288_s5 = inlined_call_operand.vmem [shape: f32[1,128], index: 5, kind: input, shape index: {}]   ;;  %s3289_s6 = inlined_call_operand.vmem [shape: bf16[512,128], index: 6, kind: output, shape index: {}]  }
   0x1 LB: > { %s2072_s22 = sadd.s32 4294967295, %s2718_s21   ;;  %p2076_p0 = scmp.ge.s32.totalorder %s2718_s21, 1  ;;  %s2718_s21 = sphi %s2756_s21, %s16_s21  }
   0x2   : > { %p246_p1 = scmp.lt.s32.totalorder %s2718_s21, 3 }
   0x4   : > { %p247_p2 = pnand %p2076_p0, %p246_p1 }
   0x6   : > { %250 = sbr.rel (%p247_p2) target bundleno = 380 (0x17c), region = 44 }
   0xd   : > { %v2643_v0 = vld [vmem:[%s3287_s4] sm:$0xff]   ;;  %v2644_v1 = vld [vmem:[%s3287_s4 + $0x8] sm:$0xff]   ;;  %vm522_vm0 = vcmask 1044480   ;;  %v2645_v2 = vld [vmem:[%s3287_s4 + $0x10] sm:$0xff]   ;;  %s2077_s29 = sshll.u32 %s2072_s22, 5  ;;  %vm523_vm1 = vcmask 1045504  }
   0xe   : > { %2466 = vmatprep.subr.bf16.mxu0 %v2643_v0  ;;  %2508 = vmatprep.subr.bf16.mxu1 %v2643_v0  ;;  %v2720_v3 = vmov 65535   ;;  %p292_p3 = scmp.lt.s32.totalorder %s2077_s29, 63  ;;  %v2646_v5 = vld [vmem:[%s3287_s4 + $0x18] sm:$0xff]   ;;  %v2647_v6 = vld [vmem:[%s3287_s4 + $0x20] sm:$0x3f]   ;;  %vm473_vm2 = vcmask 613376  }
   0xf   : > { %2467 = vmatpush3.bf16.msra.mxu0 %v2643_v0  ;;  %2509 = vmatpush3.bf16.msra.mxu1 %v2643_v0  ;;  %v524_v4 = vsel %vm522_vm0, 4294967295, %v2720_v3 }
  0x10   : > { %2468 = vmatprep.subr.bf16.mxu0 %v2644_v1  ;;  %2510 = vmatprep.subr.bf16.mxu1 %v2644_v1  ;;  %s3374_s29 = smov (!%p292_p3, %s2077_s29), 63  ;;  %v525_v7 = vsel %vm523_vm1, %v524_v4, 0 }
  0x11   : > { %s2779_s10 = sshll.u32 %s3374_s29, 2  ;;  %v527_v8 = vand.u32 %v2647_v6, %v525_v7 }
  0x12   : > { %s2785_s13 = scalar_lea.vmem %s3283_s0, %s2779_s10  ;;  %s2791_s16 = scalar_lea.vmem %s3284_s1, %s2779_s10 }
  0x13   : > { %2469 = vmatpush3.bf16.msra.mxu0 %v2644_v1  ;;  %2511 = vmatpush3.bf16.msra.mxu1 %v2644_v1  ;;  %v2648_v9 = vld [vmem:[%s2785_s13] sm:$0xff]   ;;  %v2650_v11 = vld [vmem:[%s2785_s13 + $0x8] sm:$0xff]   ;;  %v2652_v13 = vld [vmem:[%s2785_s13 + $0x10] sm:$0xff]   ;;  %s2829_s19 = scalar_lea.vmem %s3285_s2, %s2779_s10  ;;  %s2835_s23 = scalar_lea.vmem %s3286_s3, %s2779_s10 }
  0x14   : > { %2470 = vmatprep.subr.bf16.mxu0 %v2645_v2  ;;  %2512 = vmatprep.subr.bf16.mxu1 %v2645_v2  ;;  %v2649_v10 = vld [vmem:[%s2791_s16] sm:$0xff]   ;;  %v2651_v12 = vld [vmem:[%s2791_s16 + $0x8] sm:$0xff]   ;;  %v2653_v14 = vld [vmem:[%s2791_s16 + $0x10] sm:$0xff]   ;;  %s3153_s28 = scalar_lea.vmem %s3289_s6, %s2779_s10 }
  0x15   : > { %2476 = vmatprep.mubr.msk.bf16.mxu0 %vm473_vm2, %v2648_v9  ;;  %2518 = vmatprep.mubr.msk.bf16.mxu1 %vm473_vm2, %v2649_v10  ;;  %v2654_v15 = vld [vmem:[%s2785_s13 + $0x18] sm:$0xff]   ;;  %v2656_v17 = vld [vmem:[%s2785_s13 + $0x20] sm:$0xff]   ;;  %v2658_v19 = vld [vmem:[%s2785_s13 + $0x28] sm:$0xff]  }
  0x16   : > { %v2655_v16 = vld [vmem:[%s2791_s16 + $0x18] sm:$0xff]   ;;  %v2657_v18 = vld [vmem:[%s2791_s16 + $0x20] sm:$0xff]   ;;  %v2659_v20 = vld [vmem:[%s2791_s16 + $0x28] sm:$0xff]  }
  0x17   : > { %2471 = vmatpush3.bf16.msra.mxu0 %v2645_v2  ;;  %2513 = vmatpush3.bf16.msra.mxu1 %v2645_v2  ;;  %v2660_v21 = vld [vmem:[%s2785_s13 + $0x30] sm:$0xff]   ;;  %v2662_v23 = vld [vmem:[%s2785_s13 + $0x38] sm:$0xff]   ;;  %v2664_v25 = vld [vmem:[%s2785_s13 + $0x40] sm:$0xff]  }
  0x18   : > { %2472 = vmatprep.subr.bf16.mxu0 %v2646_v5  ;;  %2514 = vmatprep.subr.bf16.mxu1 %v2646_v5  ;;  %v2661_v22 = vld [vmem:[%s2791_s16 + $0x30] sm:$0xff]   ;;  %v2663_v24 = vld [vmem:[%s2791_s16 + $0x38] sm:$0xff]   ;;  %v2665_v26 = vld [vmem:[%s2791_s16 + $0x40] sm:$0xff]  }
  0x19   : > { %v2666_v27 = vld [vmem:[%s2785_s13 + $0x48] sm:$0xff]   ;;  %v2668_v29 = vld [vmem:[%s2785_s13 + $0x50] sm:$0xff]   ;;  %v2670_v31 = vld [vmem:[%s2785_s13 + $0x58] sm:$0xff]  }
  0x1a   : > { %v2667_v28 = vld [vmem:[%s2791_s16 + $0x48] sm:$0xff]   ;;  %v2669_v30 = vld [vmem:[%s2791_s16 + $0x50] sm:$0xff]   ;;  %v2671_v32 = vld [vmem:[%s2791_s16 + $0x58] sm:$0xff]  }
  0x1b   : > { %2473 = vmatpush3.bf16.msra.mxu0 %v2646_v5  ;;  %2515 = vmatpush3.bf16.msra.mxu1 %v2646_v5  ;;  %v2672_v33 = vld [vmem:[%s2785_s13 + $0x60] sm:$0xff]   ;;  %v2674_v35 = vld [vmem:[%s2785_s13 + $0x68] sm:$0xff]   ;;  %v2676_v37 = vld [vmem:[%s2785_s13 + $0x70] sm:$0xff]  }
  0x1c   : > { %2474 = vmatprep.subr.bf16.mxu0 %v527_v8  ;;  %2516 = vmatprep.subr.bf16.mxu1 %v527_v8  ;;  %v2673_v34 = vld [vmem:[%s2791_s16 + $0x60] sm:$0xff]   ;;  %v2675_v36 = vld [vmem:[%s2791_s16 + $0x68] sm:$0xff]   ;;  %v2677_v38 = vld [vmem:[%s2791_s16 + $0x70] sm:$0xff]  }
  0x1d   : > { %v2678_v39 = vld [vmem:[%s2785_s13 + $0x78] sm:$0xff]   ;;  %v2680_v41 = vld [vmem:[%s2829_s19] sm:$0xff]   ;;  %v2682_v43 = vld [vmem:[%s2829_s19 + $0x8] sm:$0xff]  }
  0x1e   : > { %v2679_v40 = vld [vmem:[%s2791_s16 + $0x78] sm:$0xff]   ;;  %v2681_v42 = vld [vmem:[%s2835_s23] sm:$0xff]   ;;  %v2683_v44 = vld [vmem:[%s2835_s23 + $0x8] sm:$0xff]  }
  0x1f   : > { %2475 = vmatpush3.bf16.msra.mxu0 %v527_v8  ;;  %2517 = vmatpush3.bf16.msra.mxu1 %v527_v8  ;;  %v2684_v45 = vld [vmem:[%s2829_s19 + $0x10] sm:$0xff]   ;;  %v2686_v47 = vld [vmem:[%s2829_s19 + $0x18] sm:$0xff]   ;;  %v2688_v49 = vld [vmem:[%s2829_s19 + $0x20] sm:$0xff]  }
  0x20   : > { %2550 = vmatprep.subr.bf16.mxu0 %v2643_v0  ;;  %2592 = vmatprep.subr.bf16.mxu1 %v2643_v0  ;;  %v2685_v46 = vld [vmem:[%s2835_s23 + $0x10] sm:$0xff]   ;;  %v2687_v48 = vld [vmem:[%s2835_s23 + $0x18] sm:$0xff]   ;;  %v2689_v50 = vld [vmem:[%s2835_s23 + $0x20] sm:$0xff]  }
  0x21   : > { %v2690_v51 = vld [vmem:[%s2829_s19 + $0x28] sm:$0xff]   ;;  %v2692_v53 = vld [vmem:[%s2829_s19 + $0x30] sm:$0xff]   ;;  %v2694_v55 = vld [vmem:[%s2829_s19 + $0x38] sm:$0xff]  }
  0x22   : > { %2477 = vmatmul.mubr.msk.bf16.vlgmr.msra.gmra.mrb[0].mxu0 %vm473_vm2, %v2650_v11  ;;  %2519 = vmatmul.mubr.msk.bf16.vlgmr.msra.gmra.mrb[0].mxu1 %vm473_vm2, %v2651_v12  ;;  %v2691_v52 = vld [vmem:[%s2835_s23 + $0x28] sm:$0xff]   ;;  %v2693_v54 = vld [vmem:[%s2835_s23 + $0x30] sm:$0xff]   ;;  %v2695_v56 = vld [vmem:[%s2835_s23 + $0x38] sm:$0xff]  }
  0x23   : > { %2551 = vmatpush3.bf16.msra.mxu0 %v2643_v0  ;;  %2593 = vmatpush3.bf16.msra.mxu1 %v2643_v0  ;;  %v2696_v57 = vld [vmem:[%s2829_s19 + $0x40] sm:$0xff]   ;;  %v2698_v59 = vld [vmem:[%s2829_s19 + $0x48] sm:$0xff]   ;;  %v2700_v61 = vld [vmem:[%s2829_s19 + $0x50] sm:$0xff]  }
  0x24   : > { %2480 = vmatprep.mubr.msk.bf16.mxu0 %vm473_vm2, %v2652_v13  ;;  %2522 = vmatprep.mubr.msk.bf16.mxu1 %vm473_vm2, %v2653_v14  ;;  %v2697_v58 = vld [vmem:[%s2835_s23 + $0x40] sm:$0xff]   ;;  %v2699_v60 = vld [vmem:[%s2835_s23 + $0x48] sm:$0xff]   ;;  %v2701_v62 = vld [vmem:[%s2835_s23 + $0x50] sm:$0xff]  }
  0x25   : > { %2552 = vmatprep.subr.bf16.mxu0 %v2644_v1  ;;  %2594 = vmatprep.subr.bf16.mxu1 %v2644_v1  ;;  %v2702_v63 = vld [vmem:[%s2829_s19 + $0x58] sm:$0xff]   ;;  %v2706_v3 = vld [vmem:[%s2829_s19 + $0x68] sm:$0xff]   ;;  %v2709_v6 = vld [vmem:[%s2835_s23 + $0x70] sm:$0xff]  }
  0x26   : > { %v2703_v0 = vld [vmem:[%s2835_s23 + $0x58] sm:$0xff]   ;;  %v2707_v4 = vld [vmem:[%s2835_s23 + $0x68] sm:$0xff]  }
  0x27   : > { %2553 = vmatpush3.bf16.msra.mxu0 %v2644_v1  ;;  %2595 = vmatpush3.bf16.msra.mxu1 %v2644_v1  ;;  %v2704_v1 = vld [vmem:[%s2829_s19 + $0x60] sm:$0xff]   ;;  %v2710_v7 = vld [vmem:[%s2829_s19 + $0x78] sm:$0xff]  }
  0x28   : > { %2554 = vmatprep.subr.bf16.mxu0 %v2645_v2  ;;  %2596 = vmatprep.subr.bf16.mxu1 %v2645_v2 }
  0x2a   : > { %2481 = vmatmul.mubr.msk.bf16.gmra.mrb[4].mxu0 %vm473_vm2, %v2654_v15  ;;  %2523 = vmatmul.mubr.msk.bf16.gmra.mrb[4].mxu1 %vm473_vm2, %v2655_v16 }
  0x2b   : > { %2484 = vmatprep.mubr.msk.bf16.mxu0 %vm473_vm2, %v2656_v17  ;;  %2526 = vmatprep.mubr.msk.bf16.mxu1 %vm473_vm2, %v2657_v18 }
  0x2c   : > { %2555 = vmatpush3.bf16.msra.mxu0 %v2645_v2  ;;  %2597 = vmatpush3.bf16.msra.mxu1 %v2645_v2  ;;  %v2705_v2 = vld [vmem:[%s2835_s23 + $0x60] sm:$0xff]  }
  0x2d   : > { %2556 = vmatprep.subr.bf16.mxu0 %v2646_v5  ;;  %2598 = vmatprep.subr.bf16.mxu1 %v2646_v5 }
  0x30   : > { %2557 = vmatpush3.bf16.msra.mxu0 %v2646_v5  ;;  %2599 = vmatpush3.bf16.msra.mxu1 %v2646_v5  ;;  %v2708_v5 = vld [vmem:[%s2829_s19 + $0x70] sm:$0xff]  }
  0x31   : > { %2558 = vmatprep.subr.bf16.mxu0 %v527_v8  ;;  %2600 = vmatprep.subr.bf16.mxu1 %v527_v8 }
  0x32   : > { %2485 = vmatmul.mubr.msk.bf16.gmra.mrb[8].mxu0 %vm473_vm2, %v2658_v19  ;;  %2527 = vmatmul.mubr.msk.bf16.gmra.mrb[8].mxu1 %vm473_vm2, %v2659_v20 }
  0x33   : > { %2488 = vmatprep.mubr.msk.bf16.mxu0 %vm473_vm2, %v2660_v21  ;;  %2530 = vmatprep.mubr.msk.bf16.mxu1 %vm473_vm2, %v2661_v22 }
  0x34   : > { %2559 = vmatpush3.bf16.msra.mxu0 %v527_v8  ;;  %2601 = vmatpush3.bf16.msra.mxu1 %v527_v8  ;;  %v2711_v8 = vld [vmem:[%s2835_s23 + $0x78] sm:$0xff]  }
  0x3a   : > { %2489 = vmatmul.mubr.msk.bf16.gmra.mrb[12].mxu0 %vm473_vm2, %v2662_v23  ;;  %2531 = vmatmul.mubr.msk.bf16.gmra.mrb[12].mxu1 %vm473_vm2, %v2663_v24 }
  0x3b   : > { %2492 = vmatprep.mubr.msk.bf16.mxu0 %vm473_vm2, %v2664_v25  ;;  %2534 = vmatprep.mubr.msk.bf16.mxu1 %vm473_vm2, %v2665_v26 }
  0x42   : > { %2493 = vmatmul.mubr.msk.bf16.gmra.mrb[16].mxu0 %vm473_vm2, %v2666_v27  ;;  %2535 = vmatmul.mubr.msk.bf16.gmra.mrb[16].mxu1 %vm473_vm2, %v2667_v28 }
  0x43   : > { %2496 = vmatprep.mubr.msk.bf16.mxu0 %vm473_vm2, %v2668_v29  ;;  %2538 = vmatprep.mubr.msk.bf16.mxu1 %vm473_vm2, %v2669_v30 }
  0x4a   : > { %2497 = vmatmul.mubr.msk.bf16.gmra.mrb[20].mxu0 %vm473_vm2, %v2670_v31  ;;  %2539 = vmatmul.mubr.msk.bf16.gmra.mrb[20].mxu1 %vm473_vm2, %v2671_v32 }
  0x4b   : > { %2500 = vmatprep.mubr.msk.bf16.mxu0 %vm473_vm2, %v2672_v33  ;;  %2542 = vmatprep.mubr.msk.bf16.mxu1 %vm473_vm2, %v2673_v34 }
  0x52   : > { %2501 = vmatmul.mubr.msk.bf16.gmra.mrb[24].mxu0 %vm473_vm2, %v2674_v35  ;;  %2543 = vmatmul.mubr.msk.bf16.gmra.mrb[24].mxu1 %vm473_vm2, %v2675_v36 }
  0x53   : > { %2504 = vmatprep.mubr.msk.bf16.mxu0 %vm473_vm2, %v2676_v37  ;;  %2546 = vmatprep.mubr.msk.bf16.mxu1 %vm473_vm2, %v2677_v38 }
  0x5a   : > { %2505 = vmatmul.mubr.msk.bf16.gmra.mrb[28].mxu0 %vm473_vm2, %v2678_v39  ;;  %2547 = vmatmul.mubr.msk.bf16.gmra.mrb[28].mxu1 %vm473_vm2, %v2679_v40 }
  0x5b   : > { %2560 = vmatprep.mubr.msk.bf16.mxu0 %vm473_vm2, %v2680_v41  ;;  %2602 = vmatprep.mubr.msk.bf16.mxu1 %vm473_vm2, %v2681_v42 }
  0x62   : > { %2561 = vmatmul.mubr.msk.bf16.vlgmr.msra.gmra.mrb[32].mxu0 %vm473_vm2, %v2682_v43  ;;  %2603 = vmatmul.mubr.msk.bf16.vlgmr.msra.gmra.mrb[32].mxu1 %vm473_vm2, %v2683_v44 }
  0x63   : > { %2564 = vmatprep.mubr.msk.bf16.mxu0 %vm473_vm2, %v2684_v45  ;;  %2606 = vmatprep.mubr.msk.bf16.mxu1 %vm473_vm2, %v2685_v46 }
  0x6a   : > { %2565 = vmatmul.mubr.msk.bf16.gmra.mrb[36].mxu0 %vm473_vm2, %v2686_v47  ;;  %2607 = vmatmul.mubr.msk.bf16.gmra.mrb[36].mxu1 %vm473_vm2, %v2687_v48 }
  0x6b   : > { %2568 = vmatprep.mubr.msk.bf16.mxu0 %vm473_vm2, %v2688_v49  ;;  %2610 = vmatprep.mubr.msk.bf16.mxu1 %vm473_vm2, %v2689_v50 }
  0x72   : > { %2569 = vmatmul.mubr.msk.bf16.gmra.mrb[40].mxu0 %vm473_vm2, %v2690_v51  ;;  %2611 = vmatmul.mubr.msk.bf16.gmra.mrb[40].mxu1 %vm473_vm2, %v2691_v52 }
  0x73   : > { %2572 = vmatprep.mubr.msk.bf16.mxu0 %vm473_vm2, %v2692_v53  ;;  %2614 = vmatprep.mubr.msk.bf16.mxu1 %vm473_vm2, %v2693_v54 }
  0x7a   : > { %2573 = vmatmul.mubr.msk.bf16.gmra.mrb[44].mxu0 %vm473_vm2, %v2694_v55  ;;  %2615 = vmatmul.mubr.msk.bf16.gmra.mrb[44].mxu1 %vm473_vm2, %v2695_v56 }
  0x7b   : > { %2576 = vmatprep.mubr.msk.bf16.mxu0 %vm473_vm2, %v2696_v57  ;;  %2618 = vmatprep.mubr.msk.bf16.mxu1 %vm473_vm2, %v2697_v58 }
  0x82   : > { %2577 = vmatmul.mubr.msk.bf16.gmra.mrb[48].mxu0 %vm473_vm2, %v2698_v59  ;;  %2619 = vmatmul.mubr.msk.bf16.gmra.mrb[48].mxu1 %vm473_vm2, %v2699_v60 }
  0x83   : > { %2580 = vmatprep.mubr.msk.bf16.mxu0 %vm473_vm2, %v2700_v61  ;;  %2622 = vmatprep.mubr.msk.bf16.mxu1 %vm473_vm2, %v2701_v62 }
  0x8a   : > { %2581 = vmatmul.mubr.msk.bf16.gmra.mrb[52].mxu0 %vm473_vm2, %v2702_v63  ;;  %2623 = vmatmul.mubr.msk.bf16.gmra.mrb[52].mxu1 %vm473_vm2, %v2703_v0 }
  0x8b   : > { %2584 = vmatprep.mubr.msk.bf16.mxu0 %vm473_vm2, %v2704_v1  ;;  %2626 = vmatprep.mubr.msk.bf16.mxu1 %vm473_vm2, %v2705_v2 }
  0x92   : > { %2585 = vmatmul.mubr.msk.bf16.gmra.mrb[56].mxu0 %vm473_vm2, %v2706_v3  ;;  %2627 = vmatmul.mubr.msk.bf16.gmra.mrb[56].mxu1 %vm473_vm2, %v2707_v4 }
  0x93   : > { %2588 = vmatprep.mubr.msk.bf16.mxu0 %vm473_vm2, %v2708_v5  ;;  %2630 = vmatprep.mubr.msk.bf16.mxu1 %vm473_vm2, %v2709_v6 }
  0x9a   : > { %2589 = vmatmul.mubr.msk.bf16.gmra.mrb[60].mxu0 %vm473_vm2, %v2710_v7  ;;  %2631 = vmatmul.mubr.msk.bf16.gmra.mrb[60].mxu1 %vm473_vm2, %v2711_v8 }
  0xf5   : > { %v2933_v9 = vpop.f32.mrb[0].mxu0  ;;  %v2935_v10 = vpop.f32.mrb[0].mxu1 }
  0xf6   : > { %v2939_v12 = vpop.f32.mrb[1].mxu0  ;;  %v2941_v13 = vpop.f32.mrb[1].mxu1 }
  0xf7   : > { %v2945_v15 = vpop.f32.mrb[2].mxu0  ;;  %v2947_v16 = vpop.f32.mrb[2].mxu1  ;;  %v3325_v1 = vmax.f32 %v2939_v12, %v2941_v13 }
  0xf8   : > { %v2951_v18 = vpop.f32.mrb[3].mxu0  ;;  %v2953_v19 = vpop.f32.mrb[3].mxu1 }
  0xfd   : > { %v2957_v21 = vpop.f32.mrb[4].mxu0  ;;  %v2959_v22 = vpop.f32.mrb[4].mxu1 }
  0xfe   : > { %v2963_v24 = vpop.f32.mrb[5].mxu0  ;;  %v2965_v25 = vpop.f32.mrb[5].mxu1 }
  0xff   : > { %v2969_v27 = vpop.f32.mrb[6].mxu0  ;;  %v2971_v28 = vpop.f32.mrb[6].mxu1 }
 0x100   : > { %v2975_v30 = vpop.f32.mrb[7].mxu0  ;;  %v2977_v31 = vpop.f32.mrb[7].mxu1 }
 0x105   : > { %v2981_v33 = vpop.f32.mrb[8].mxu0  ;;  %v2983_v34 = vpop.f32.mrb[8].mxu1 }
 0x106   : > { %v2987_v36 = vpop.f32.mrb[9].mxu0  ;;  %v2989_v37 = vpop.f32.mrb[9].mxu1 }
 0x107   : > { %v2993_v39 = vpop.f32.mrb[10].mxu0  ;;  %v2995_v40 = vpop.f32.mrb[10].mxu1 }
 0x108   : > { %v2999_v42 = vpop.f32.mrb[11].mxu0  ;;  %v3001_v43 = vpop.f32.mrb[11].mxu1 }
 0x10d   : > { %v3005_v45 = vpop.f32.mrb[12].mxu0  ;;  %v3007_v46 = vpop.f32.mrb[12].mxu1 }
 0x10e   : > { %v3011_v48 = vpop.f32.mrb[13].mxu0  ;;  %v3013_v49 = vpop.f32.mrb[13].mxu1 }
 0x10f   : > { %v3017_v51 = vpop.f32.mrb[14].mxu0  ;;  %v3019_v52 = vpop.f32.mrb[14].mxu1 }
 0x110   : > { %v3023_v54 = vpop.f32.mrb[15].mxu0  ;;  %v3025_v55 = vpop.f32.mrb[15].mxu1 }
 0x115   : > { %v3029_v57 = vpop.f32.mrb[16].mxu0  ;;  %v3031_v58 = vpop.f32.mrb[16].mxu1 }
 0x116   : > { %v3035_v60 = vpop.f32.mrb[17].mxu0  ;;  %v3037_v61 = vpop.f32.mrb[17].mxu1 }
 0x117   : > { %v3041_v63 = vpop.f32.mrb[18].mxu0  ;;  %v3043_v0 = vpop.f32.mrb[18].mxu1 }
 0x118   : > { %v3047_v2 = vpop.f32.mrb[19].mxu0  ;;  %v3049_v3 = vpop.f32.mrb[19].mxu1 }
 0x11d   : > { %v3053_v5 = vpop.f32.mrb[20].mxu0  ;;  %v3055_v6 = vpop.f32.mrb[20].mxu1 }
 0x11e   : > { %v3059_v8 = vpop.f32.mrb[21].mxu0  ;;  %v3061_v62 = vpop.f32.mrb[21].mxu1 }
 0x11f   : > { %v3065_v59 = vpop.f32.mrb[22].mxu0  ;;  %v3067_v56 = vpop.f32.mrb[22].mxu1 }
 0x120   : > { %v3071_v53 = vpop.f32.mrb[23].mxu0  ;;  %v3073_v50 = vpop.f32.mrb[23].mxu1 }
 0x121   : > { %3307 = vst [vmem:[#allocation2_spill] sm:$0xff] %v3073_v50 }
 0x125   : > { %v3077_v47 = vpop.f32.mrb[24].mxu0  ;;  %v3079_v44 = vpop.f32.mrb[24].mxu1 }
 0x126   : > { %3308 = vst [vmem:[#allocation3_spill] sm:$0xff] %v3077_v47  ;;  %3309 = vst [vmem:[#allocation4_spill] sm:$0xff] %v3079_v44  ;;  %v3083_v41 = vpop.f32.mrb[25].mxu0  ;;  %v3085_v38 = vpop.f32.mrb[25].mxu1 }
 0x127   : > { %3310 = vst [vmem:[#allocation5_spill] sm:$0xff] %v3083_v41  ;;  %3311 = vst [vmem:[#allocation6_spill] sm:$0xff] %v3085_v38  ;;  %v3089_v35 = vpop.f32.mrb[26].mxu0  ;;  %v3091_v32 = vpop.f32.mrb[26].mxu1  ;;  %v3131_v38 = vld [vmem:[%s3288_s5] ss:$0 sm:$0xff] }
 0x128   : > { %3312 = vst [vmem:[#allocation7_spill] sm:$0xff] %v3089_v35  ;;  %3313 = vst [vmem:[#allocation8_spill] sm:$0xff] %v3091_v32  ;;  %v3095_v29 = vpop.f32.mrb[27].mxu0  ;;  %v3097_v26 = vpop.f32.mrb[27].mxu1  ;;  %v3324_v35 = vmax.f32 %v2933_v9, %v2935_v10 }
 0x129   : > { %3314 = vst [vmem:[#allocation9_spill] sm:$0xff] %v3095_v29  ;;  %3315 = vst [vmem:[#allocation10_spill] sm:$0xff] %v3097_v26 }
 0x12d   : > { %v3101_v23 = vpop.f32.mrb[28].mxu0  ;;  %v3103_v20 = vpop.f32.mrb[28].mxu1 }
 0x12e   : > { %3316 = vst [vmem:[#allocation11_spill] sm:$0xff] %v3101_v23  ;;  %3317 = vst [vmem:[#allocation12_spill] sm:$0xff] %v3103_v20  ;;  %v3107_v17 = vpop.f32.mrb[29].mxu0  ;;  %v3109_v14 = vpop.f32.mrb[29].mxu1 }
 0x12f   : > { %3318 = vst [vmem:[#allocation13_spill] sm:$0xff] %v3107_v17  ;;  %3319 = vst [vmem:[#allocation14_spill] sm:$0xff] %v3109_v14  ;;  %v3113_v11 = vpop.f32.mrb[30].mxu0  ;;  %v3115_v32 = vpop.f32.mrb[30].mxu1 }
 0x130   : > { %3320 = vst [vmem:[#allocation15_spill] sm:$0xff] %v3113_v11  ;;  %3321 = vst [vmem:[#allocation16_spill] sm:$0xff] %v3115_v32  ;;  %v3119_v26 = vpop.f32.mrb[31].mxu0  ;;  %v3121_v29 = vpop.f32.mrb[31].mxu1 }
 0x131   : > { %3322 = vst [vmem:[#allocation17_spill] sm:$0xff] %v3119_v26  ;;  %3323 = vst [vmem:[#allocation18_spill] sm:$0xff] %v3121_v29  ;;  %v3326_v29 = vmax.f32 %v2945_v15, %v2947_v16 }
 0x135   : > { %v2562_v20 = vpop.f32.mrb[32].mxu0  ;;  %v2604_v23 = vpop.f32.mrb[32].mxu1 }
 0x136   : > { %v1366_v7 = vmax.f32 %v3324_v35, %v2562_v20  ;;  %v1237_v14 = vpop.f32.mrb[33].mxu0  ;;  %v1590_v17 = vpop.f32.mrb[33].mxu1  ;;  %v3327_v35 = vmax.f32 %v2951_v18, %v2953_v19 }
 0x137   : > { %v1364_v32 = vmax.f32 %v3325_v1, %v1237_v14  ;;  %v2563_v11 = vpop.f32.mrb[34].mxu0  ;;  %v2605_v41 = vpop.f32.mrb[34].mxu1 }
 0x138   : > { %v1719_v4 = vmax.f32 %v1366_v7, %v2604_v23  ;;  %v1367_v26 = vmax.f32 %v3326_v29, %v2563_v11  ;;  %v1240_v9 = vpop.f32.mrb[35].mxu0  ;;  %v1593_v10 = vpop.f32.mrb[35].mxu1 }
 0x139   : > { %v1717_v20 = vmax.f32 %v1364_v32, %v1590_v17  ;;  %v1365_v44 = vmax.f32 %v3327_v35, %v1240_v9  ;;  %v3328_v17 = vmax.f32 %v2957_v21, %v2959_v22  ;;  %v3330_v22 = vmax.f32 %v2969_v27, %v2971_v28 }
 0x13a   : > { %v1758_v47 = vadd.f32 %v3131_v38, %v1719_v4  ;;  %v1720_v50 = vmax.f32 %v1367_v26, %v2605_v41  ;;  %v3329_v41 = vmax.f32 %v2963_v24, %v2965_v25 }
 0x13b   : > { %v1756_v12 = vadd.f32 %v3131_v38, %v1717_v20  ;;  %v1718_v13 = vmax.f32 %v1365_v44, %v1593_v10 }
 0x13c   : > { %v1759_v14 = vadd.f32 %v3131_v38, %v1720_v50  ;;  %v1790_v16 = vmax.f32 %v1758_v47, 0.0 }
 0x13d   : > { %v1757_v23 = vadd.f32 %v3131_v38, %v1718_v13  ;;  %v2566_v15 = vpop.f32.mrb[36].mxu0  ;;  %v2608_v11 = vpop.f32.mrb[36].mxu1  ;;  %v1788_v1 = vmax.f32 %v1756_v12, 0.0  ;;  %v3331_v12 = vmax.f32 %v2975_v30, %v2977_v31  ;;  %v3332_v30 = vmax.f32 %v2981_v33, %v2983_v34 }
 0x13e   : > { %v1791_v29 = vmax.f32 %v1759_v14, 0.0  ;;  %v1370_v18 = vmax.f32 %v3328_v17, %v2566_v15  ;;  %v1253_v19 = vpop.f32.mrb[37].mxu0  ;;  %v1606_v32 = vpop.f32.mrb[37].mxu1 }
 0x13f   : > { %v1789_v26 = vmax.f32 %v1757_v23, 0.0  ;;  %v1368_v44 = vmax.f32 %v3329_v41, %v1253_v19  ;;  %v2567_v47 = vpop.f32.mrb[38].mxu0  ;;  %v2609_v50 = vpop.f32.mrb[38].mxu1 }
 0x140   : > { %v2295_v4 = vpack.c.bf16 %v1791_v29, %v1790_v16  ;;  %v1723_v21 = vmax.f32 %v1370_v18, %v2608_v11  ;;  %v1371_v7 = vmax.f32 %v3330_v22, %v2567_v47  ;;  %v1256_v9 = vpop.f32.mrb[39].mxu0  ;;  %v1609_v10 = vpop.f32.mrb[39].mxu1 }
 0x141   : > { %v2290_v20 = vpack.c.bf16 %v1789_v26, %v1788_v1  ;;  %v1721_v35 = vmax.f32 %v1368_v44, %v1606_v32  ;;  %v1369_v13 = vmax.f32 %v3331_v12, %v1256_v9  ;;  %v3333_v1 = vmax.f32 %v2987_v36, %v2989_v37 }
 0x142   : > { %2367 = vst [vmem:[%s3153_s28 + $0x8] sm:$0xff] %v2295_v4   ;;  %v1762_v24 = vadd.f32 %v3131_v38, %v1723_v21  ;;  %v1724_v25 = vmax.f32 %v1371_v7, %v2609_v50  ;;  %v3334_v4 = vmax.f32 %v2993_v39, %v2995_v40  ;;  %v3335_v9 = vmax.f32 %v2999_v42, %v3001_v43 }
 0x143   : > { %2291 = vst [vmem:[%s3153_s28] sm:$0xff] %v2290_v20   ;;  %v1760_v14 = vadd.f32 %v3131_v38, %v1721_v35  ;;  %v1722_v23 = vmax.f32 %v1369_v13, %v1609_v10  ;;  %v3336_v42 = vmax.f32 %v3005_v45, %v3007_v46 }
 0x144   : > { %v1763_v15 = vadd.f32 %v3131_v38, %v1724_v25  ;;  %v1794_v16 = vmax.f32 %v1762_v24, 0.0 }
 0x145   : > { %v1761_v27 = vadd.f32 %v3131_v38, %v1722_v23  ;;  %v2570_v28 = vpop.f32.mrb[40].mxu0  ;;  %v2612_v11 = vpop.f32.mrb[40].mxu1  ;;  %v1792_v19 = vmax.f32 %v1760_v14, 0.0 }
 0x146   : > { %v1795_v29 = vmax.f32 %v1763_v15, 0.0  ;;  %v1374_v31 = vmax.f32 %v3332_v30, %v2570_v28  ;;  %v1269_v17 = vpop.f32.mrb[41].mxu0  ;;  %v1622_v18 = vpop.f32.mrb[41].mxu1  ;;  %v3337_v28 = vmax.f32 %v3011_v48, %v3013_v49 }
 0x147   : > { %v1793_v32 = vmax.f32 %v1761_v27, 0.0  ;;  %v1372_v26 = vmax.f32 %v3333_v1, %v1269_v17  ;;  %v2571_v41 = vpop.f32.mrb[42].mxu0  ;;  %v2613_v44 = vpop.f32.mrb[42].mxu1  ;;  %v3338_v17 = vmax.f32 %v3017_v51, %v3019_v52  ;;  %v3339_v1 = vmax.f32 %v3023_v54, %v3025_v55 }
 0x148   : > { %v2305_v47 = vpack.c.bf16 %v1795_v29, %v1794_v16  ;;  %v1727_v50 = vmax.f32 %v1374_v31, %v2612_v11  ;;  %v1375_v21 = vmax.f32 %v3334_v4, %v2571_v41  ;;  %v1272_v33 = vpop.f32.mrb[43].mxu0  ;;  %v1625_v34 = vpop.f32.mrb[43].mxu1  ;;  %v3340_v54 = vmax.f32 %v3029_v57, %v3031_v58 }
 0x149   : > { %v2300_v22 = vpack.c.bf16 %v1793_v32, %v1792_v19  ;;  %v1725_v7 = vmax.f32 %v1372_v26, %v1622_v18  ;;  %v1373_v10 = vmax.f32 %v3335_v9, %v1272_v33  ;;  %v3341_v9 = vmax.f32 %v3035_v60, %v3037_v61 }
 0x14a   : > { %2369 = vst [vmem:[%s3153_s28 + $0x18] sm:$0xff] %v2305_v47   ;;  %v1766_v36 = vadd.f32 %v3131_v38, %v1727_v50  ;;  %v1728_v37 = vmax.f32 %v1375_v21, %v2613_v44 }
 0x14b   : > { %2368 = vst [vmem:[%s3153_s28 + $0x10] sm:$0xff] %v2300_v22   ;;  %v1764_v20 = vadd.f32 %v3131_v38, %v1725_v7  ;;  %v1726_v35 = vmax.f32 %v1373_v10, %v1625_v34 }
 0x14c   : > { %v1767_v12 = vadd.f32 %v3131_v38, %v1728_v37  ;;  %v1798_v24 = vmax.f32 %v1766_v36, 0.0 }
 0x14d   : > { %v1765_v39 = vadd.f32 %v3131_v38, %v1726_v35  ;;  %v2574_v40 = vpop.f32.mrb[44].mxu0  ;;  %v2616_v13 = vpop.f32.mrb[44].mxu1  ;;  %v1796_v15 = vmax.f32 %v1764_v20, 0.0 }
 0x14e   : > { %v1799_v25 = vmax.f32 %v1767_v12, 0.0  ;;  %v1378_v43 = vmax.f32 %v3336_v42, %v2574_v40  ;;  %v1285_v14 = vpop.f32.mrb[45].mxu0  ;;  %v1638_v23 = vpop.f32.mrb[45].mxu1  ;;  %v3342_v12 = vmax.f32 %v3041_v63, %v3043_v0 }
 0x14f   : > { %v1797_v27 = vmax.f32 %v1765_v39, 0.0  ;;  %v1376_v11 = vmax.f32 %v3337_v28, %v1285_v14  ;;  %v2575_v16 = vpop.f32.mrb[46].mxu0  ;;  %v2617_v29 = vpop.f32.mrb[46].mxu1 }
 0x150   : > { %v2315_v30 = vpack.c.bf16 %v1799_v25, %v1798_v24  ;;  %v1731_v31 = vmax.f32 %v1378_v43, %v2616_v13  ;;  %v1379_v18 = vmax.f32 %v3338_v17, %v2575_v16  ;;  %v1288_v45 = vpop.f32.mrb[47].mxu0  ;;  %v1641_v46 = vpop.f32.mrb[47].mxu1  ;;  %v3343_v24 = vmax.f32 %v3047_v2, %v3049_v3 }
 0x151   : > { %v2310_v19 = vpack.c.bf16 %v1797_v27, %v1796_v15  ;;  %v1729_v32 = vmax.f32 %v1376_v11, %v1638_v23  ;;  %v1377_v26 = vmax.f32 %v3339_v1, %v1288_v45  ;;  %v3344_v2 = vmax.f32 %v3053_v5, %v3055_v6 }
 0x152   : > { %2371 = vst [vmem:[%s3153_s28 + $0x28] sm:$0xff] %v2315_v30   ;;  %v1770_v48 = vadd.f32 %v3131_v38, %v1731_v31  ;;  %v1732_v49 = vmax.f32 %v1379_v18, %v2617_v29  ;;  %v3345_v30 = vmax.f32 %v3059_v8, %v3061_v62 }
 0x153   : > { %2370 = vst [vmem:[%s3153_s28 + $0x20] sm:$0xff] %v2310_v19   ;;  %v1768_v41 = vadd.f32 %v3131_v38, %v1729_v32  ;;  %v1730_v44 = vmax.f32 %v1377_v26, %v1641_v46  ;;  %v3346_v19 = vmax.f32 %v3065_v59, %v3067_v56 }
 0x154   : > { %v1771_v47 = vadd.f32 %v3131_v38, %v1732_v49  ;;  %v1802_v4 = vmax.f32 %v1770_v48, 0.0  ;;  %v3347_v48 = vld [vmem:[#allocation2_spill] sm:$0xff] }
 0x155   : > { %v1769_v51 = vadd.f32 %v3131_v38, %v1730_v44  ;;  %v2578_v52 = vpop.f32.mrb[48].mxu0  ;;  %v2620_v50 = vpop.f32.mrb[48].mxu1  ;;  %v1800_v22 = vmax.f32 %v1768_v41, 0.0  ;;  %v3348_v49 = vmax.f32 %v3071_v53, %v3347_v48 }
 0x156   : > { %v1803_v21 = vmax.f32 %v1771_v47, 0.0  ;;  %v1382_v55 = vmax.f32 %v3340_v54, %v2578_v52  ;;  %v1301_v33 = vpop.f32.mrb[49].mxu0  ;;  %v1654_v34 = vpop.f32.mrb[49].mxu1  ;;  %v3350_v54 = vld [vmem:[#allocation4_spill] sm:$0xff] }
 0x157   : > { %v1801_v7 = vmax.f32 %v1769_v51, 0.0  ;;  %v1380_v10 = vmax.f32 %v3341_v9, %v1301_v33  ;;  %v2579_v36 = vpop.f32.mrb[50].mxu0  ;;  %v2621_v37 = vpop.f32.mrb[50].mxu1  ;;  %v3352_v9 = vld [vmem:[#allocation5_spill] sm:$0xff] }
 0x158   : > { %v2325_v20 = vpack.c.bf16 %v1803_v21, %v1802_v4  ;;  %v1735_v35 = vmax.f32 %v1382_v55, %v2620_v50  ;;  %v1383_v39 = vmax.f32 %v3342_v12, %v2579_v36  ;;  %v1304_v57 = vpop.f32.mrb[51].mxu0  ;;  %v1657_v58 = vpop.f32.mrb[51].mxu1  ;;  %v3349_v21 = vld [vmem:[#allocation3_spill] sm:$0xff] }
 0x159   : > { %v2320_v40 = vpack.c.bf16 %v1801_v7, %v1800_v22  ;;  %v1733_v13 = vmax.f32 %v1380_v10, %v1654_v34  ;;  %v1381_v25 = vmax.f32 %v3343_v24, %v1304_v57  ;;  %v3351_v53 = vmax.f32 %v3349_v21, %v3350_v54  ;;  %v3353_v10 = vld [vmem:[#allocation6_spill] sm:$0xff]  ;;  %v3355_v57 = vld [vmem:[#allocation7_spill] sm:$0xff] }
 0x15a   : > { %2373 = vst [vmem:[%s3153_s28 + $0x38] sm:$0xff] %v2325_v20   ;;  %v1774_v60 = vadd.f32 %v3131_v38, %v1735_v35  ;;  %v1736_v61 = vmax.f32 %v1383_v39, %v2621_v37  ;;  %v3354_v36 = vmax.f32 %v3352_v9, %v3353_v10  ;;  %v3371_v21 = vld [vmem:[#allocation18_spill] sm:$0xff] }
 0x15b   : > { %2372 = vst [vmem:[%s3153_s28 + $0x30] sm:$0xff] %v2320_v40   ;;  %v1772_v42 = vadd.f32 %v3131_v38, %v1733_v13  ;;  %v1734_v43 = vmax.f32 %v1381_v25, %v1657_v58  ;;  %v3356_v58 = vld [vmem:[#allocation8_spill] sm:$0xff] }
 0x15c   : > { %v1775_v14 = vadd.f32 %v3131_v38, %v1736_v61  ;;  %v1806_v15 = vmax.f32 %v1774_v60, 0.0  ;;  %v3357_v40 = vmax.f32 %v3355_v57, %v3356_v58 }
 0x15d   : > { %v1773_v63 = vadd.f32 %v3131_v38, %v1734_v43  ;;  %v2582_v0 = vpop.f32.mrb[52].mxu0  ;;  %v2624_v23 = vpop.f32.mrb[52].mxu1  ;;  %v1804_v16 = vmax.f32 %v1772_v42, 0.0  ;;  %v3358_v42 = vld [vmem:[#allocation9_spill] sm:$0xff]  ;;  %v3359_v43 = vld [vmem:[#allocation10_spill] sm:$0xff] }
 0x15e   : > { %v1807_v27 = vmax.f32 %v1775_v14, 0.0  ;;  %v1386_v3 = vmax.f32 %v3344_v2, %v2582_v0  ;;  %v1317_v28 = vpop.f32.mrb[53].mxu0  ;;  %v1670_v11 = vpop.f32.mrb[53].mxu1  ;;  %v3360_v14 = vmax.f32 %v3358_v42, %v3359_v43 }
 0x15f   : > { %v1805_v29 = vmax.f32 %v1773_v63, 0.0  ;;  %v1384_v31 = vmax.f32 %v3345_v30, %v1317_v28  ;;  %v2583_v17 = vpop.f32.mrb[54].mxu0  ;;  %v2625_v18 = vpop.f32.mrb[54].mxu1  ;;  %v3361_v30 = vld [vmem:[#allocation11_spill] sm:$0xff] }
 0x160   : > { %v2335_v45 = vpack.c.bf16 %v1807_v27, %v1806_v15  ;;  %v1739_v46 = vmax.f32 %v1386_v3, %v2624_v23  ;;  %v1387_v32 = vmax.f32 %v3346_v19, %v2583_v17  ;;  %v1320_v5 = vpop.f32.mrb[55].mxu0  ;;  %v1673_v6 = vpop.f32.mrb[55].mxu1 }
 0x161   : > { %v2330_v1 = vpack.c.bf16 %v1805_v29, %v1804_v16  ;;  %v1737_v26 = vmax.f32 %v1384_v31, %v1670_v11  ;;  %v1385_v41 = vmax.f32 %v3348_v49, %v1320_v5  ;;  %v3362_v31 = vld [vmem:[#allocation12_spill] sm:$0xff]  ;;  %v3364_v5 = vld [vmem:[#allocation13_spill] sm:$0xff] }
 0x162   : > { %2375 = vst [vmem:[%s3153_s28 + $0x48] sm:$0xff] %v2335_v45   ;;  %v1778_v62 = vadd.f32 %v3131_v38, %v1739_v46  ;;  %v1740_v8 = vmax.f32 %v1387_v32, %v2625_v18  ;;  %v3363_v17 = vmax.f32 %v3361_v30, %v3362_v31 }
 0x163   : > { %2374 = vst [vmem:[%s3153_s28 + $0x40] sm:$0xff] %v2330_v1   ;;  %v1776_v44 = vadd.f32 %v3131_v38, %v1737_v26  ;;  %v1738_v47 = vmax.f32 %v1385_v41, %v1673_v6  ;;  %v3365_v6 = vld [vmem:[#allocation14_spill] sm:$0xff] }
 0x164   : > { %v1779_v51 = vadd.f32 %v3131_v38, %v1740_v8  ;;  %v1810_v50 = vmax.f32 %v1778_v62, 0.0  ;;  %v3366_v1 = vmax.f32 %v3364_v5, %v3365_v6  ;;  %v3367_v8 = vld [vmem:[#allocation15_spill] sm:$0xff] }
 0x165   : > { %v1777_v56 = vadd.f32 %v3131_v38, %v1738_v47  ;;  %v2586_v59 = vpop.f32.mrb[56].mxu0  ;;  %v2628_v52 = vpop.f32.mrb[56].mxu1  ;;  %v1808_v22 = vmax.f32 %v1776_v44, 0.0  ;;  %v3368_v44 = vld [vmem:[#allocation16_spill] sm:$0xff] }
 0x166   : > { %v1811_v4 = vmax.f32 %v1779_v51, 0.0  ;;  %v1390_v55 = vmax.f32 %v3351_v53, %v2586_v59  ;;  %v1333_v33 = vpop.f32.mrb[57].mxu0  ;;  %v1686_v34 = vpop.f32.mrb[57].mxu1  ;;  %v3369_v47 = vmax.f32 %v3367_v8, %v3368_v44 }
 0x167   : > { %v1809_v7 = vmax.f32 %v1777_v56, 0.0  ;;  %v1388_v37 = vmax.f32 %v3354_v36, %v1333_v33  ;;  %v2587_v20 = vpop.f32.mrb[58].mxu0  ;;  %v2629_v35 = vpop.f32.mrb[58].mxu1 }
 0x168   : > { %v2345_v12 = vpack.c.bf16 %v1811_v4, %v1810_v50  ;;  %v1743_v39 = vmax.f32 %v1390_v55, %v2628_v52  ;;  %v1391_v13 = vmax.f32 %v3357_v40, %v2587_v20  ;;  %v1336_v24 = vpop.f32.mrb[59].mxu0  ;;  %v1689_v25 = vpop.f32.mrb[59].mxu1  ;;  %v3370_v4 = vld [vmem:[#allocation17_spill] sm:$0xff] }
 0x169   : > { %v2340_v60 = vpack.c.bf16 %v1809_v7, %v1808_v22  ;;  %v1741_v61 = vmax.f32 %v1388_v37, %v1686_v34  ;;  %v1389_v63 = vmax.f32 %v3360_v14, %v1336_v24  ;;  %v3372_v54 = vmax.f32 %v3370_v4, %v3371_v21 }
 0x16a   : > { %2377 = vst [vmem:[%s3153_s28 + $0x58] sm:$0xff] %v2345_v12   ;;  %v1782_v0 = vadd.f32 %v3131_v38, %v1743_v39  ;;  %v1744_v23 = vmax.f32 %v1391_v13, %v2629_v35 }
 0x16b   : > { %2376 = vst [vmem:[%s3153_s28 + $0x50] sm:$0xff] %v2340_v60   ;;  %v1780_v15 = vadd.f32 %v3131_v38, %v1741_v61  ;;  %v1742_v27 = vmax.f32 %v1389_v63, %v1689_v25 }
 0x16c   : > { %v1783_v2 = vadd.f32 %v3131_v38, %v1744_v23  ;;  %v1814_v16 = vmax.f32 %v1782_v0, 0.0 }
 0x16d   : > { %v1781_v3 = vadd.f32 %v3131_v38, %v1742_v27  ;;  %v2590_v28 = vpop.f32.mrb[60].mxu0  ;;  %v2632_v11 = vpop.f32.mrb[60].mxu1  ;;  %v1812_v19 = vmax.f32 %v1780_v15, 0.0 }
 0x16e   : > { %v1815_v29 = vmax.f32 %v1783_v2, 0.0  ;;  %v1394_v18 = vmax.f32 %v3363_v17, %v2590_v28  ;;  %v1349_v45 = vpop.f32.mrb[61].mxu0  ;;  %v1702_v46 = vpop.f32.mrb[61].mxu1 }
 0x16f   : > { %v1813_v32 = vmax.f32 %v1781_v3, 0.0  ;;  %v1392_v26 = vmax.f32 %v3366_v1, %v1349_v45  ;;  %v2591_v48 = vpop.f32.mrb[62].mxu0  ;;  %v2633_v49 = vpop.f32.mrb[62].mxu1 }
 0x170   : > { %v2355_v41 = vpack.c.bf16 %v1815_v29, %v1814_v16  ;;  %v1747_v62 = vmax.f32 %v1394_v18, %v2632_v11  ;;  %v1395_v51 = vmax.f32 %v3369_v47, %v2591_v48  ;;  %v1352_v56 = vpop.f32.mrb[63].mxu0  ;;  %v1705_v59 = vpop.f32.mrb[63].mxu1 }
 0x171   : > { %v2350_v52 = vpack.c.bf16 %v1813_v32, %v1812_v19  ;;  %v1745_v50 = vmax.f32 %v1392_v26, %v1702_v46  ;;  %v1393_v53 = vmax.f32 %v3372_v54, %v1352_v56 }
 0x172   : > { %2379 = vst [vmem:[%s3153_s28 + $0x68] sm:$0xff] %v2355_v41   ;;  %v1786_v55 = vadd.f32 %v3131_v38, %v1747_v62  ;;  %v1748_v33 = vmax.f32 %v1395_v51, %v2633_v49 }
 0x173   : > { %2378 = vst [vmem:[%s3153_s28 + $0x60] sm:$0xff] %v2350_v52   ;;  %v1784_v34 = vadd.f32 %v3131_v38, %v1745_v50  ;;  %v1746_v22 = vmax.f32 %v1393_v53, %v1705_v59 }
 0x174   : > { %v1787_v7 = vadd.f32 %v3131_v38, %v1748_v33  ;;  %v1818_v10 = vmax.f32 %v1786_v55, 0.0 }
 0x175   : > { %v1785_v9 = vadd.f32 %v3131_v38, %v1746_v22  ;;  %v1816_v37 = vmax.f32 %v1784_v34, 0.0 }
 0x176   : > { %v1819_v36 = vmax.f32 %v1787_v7, 0.0 }
 0x177   : > { %v1817_v20 = vmax.f32 %v1785_v9, 0.0 }
 0x178   : > { %v2365_v35 = vpack.c.bf16 %v1819_v36, %v1818_v10 }
 0x179   : > { %v2360_v12 = vpack.c.bf16 %v1817_v20, %v1816_v37 }
 0x17a   : > { %2381 = vst [vmem:[%s3153_s28 + $0x78] sm:$0xff] %v2365_v35  }
 0x17b   : > { %2380 = vst [vmem:[%s3153_s28 + $0x70] sm:$0xff] %v2360_v12  }
 0x17c PF: > { %s16_s21 = sadd.s32 1, %s2718_s21  }
 0x17d   : > { %p13_p4 = scmp.ge.s32.totalorder %s16_s21, 4  }
 0x17f   :  { %15 = sbr.rel (!%p13_p4) target bundleno = 1 (0x1), region = 83 }

// kernel: net_forward.4
= control target key start
LH: loop header
LB: loop body
LE: loop exit
PB: predicated region body
PF: predicated region fallthrough
CT: control target
= control target key end

     0   :  { %v796_v0 = vmov 0   ;;  %vm140_vm0 = vcmask 179200   ;;  %vm153_vm1 = vcmask 1042432   ;;  %s1086_s4 = inlined_call_operand.vmem [shape: bf16[150,128], index: 4, kind: input, shape index: {}]   ;;  %s1087_s0 = inlined_call_operand.vmem [shape: bf16[56,150], index: 0, kind: input, shape index: {}]   ;;  %s1088_s1 = inlined_call_operand.vmem [shape: bf16[56,150], index: 1, kind: input, shape index: {}]   ;;  %s1089_s2 = inlined_call_operand.vmem [shape: bf16[56,150], index: 2, kind: input, shape index: {}]   ;;  %s1090_s3 = inlined_call_operand.vmem [shape: bf16[56,150], index: 3, kind: input, shape index: {}]   ;;  %s1091_s5 = inlined_call_operand.vmem [shape: f32[1,128], index: 5, kind: input, shape index: {}]   ;;  %s1092_s6 = inlined_call_operand.vmem [shape: bf16[56,128], index: 6, kind: output, shape index: {}]  }
   0x1   :  { %157 = vmatprep.subr.bf16.mxu0 %v796_v0  ;;  %273 = vmatprep.subr.bf16.mxu1 %v796_v0  ;;  %v837_v1 = vld [vmem:[%s1086_s4] sm:$0xff]   ;;  %v844_v2 = vld [vmem:[%s1086_s4 + $0x8] sm:$0xff]   ;;  %v853_v3 = vld [vmem:[%s1086_s4 + $0x10] sm:$0xff]  }
   0x2   :  { %158 = vmatpush1.bf16.msra.mxu0 %v837_v1  ;;  %274 = vmatpush1.bf16.msra.mxu1 %v837_v1  ;;  %v862_v4 = vld [vmem:[%s1086_s4 + $0x18] sm:$0xff]   ;;  %v754_v5 = vld [vmem:[%s1087_s0 + $0x4] ss:$8 sps:$4 sm:$0xff]   ;;  %v897_v9 = vld [vmem:[%s1086_s4 + $0x30] sm:$0xff]  }
   0x3   :  { %159 = vmatprep.subr.bf16.mxu0 %v796_v0  ;;  %275 = vmatprep.subr.bf16.mxu1 %v796_v0  ;;  %v757_v6 = vld [vmem:[%s1088_s1 + $0x4] ss:$8 sps:$4 sm:$0xff]   ;;  %v906_v10 = vld [vmem:[%s1086_s4 + $0x38] sm:$0xff]   ;;  %v751_v12 = vld [vmem:[%s1086_s4 + $0x48] ss:$0 sps:$4 sm:$0x77]  }
   0x4   :  { %669 = vmatprep.mubr.msk.bf16.mxu0 %vm140_vm0, %v754_v5  ;;  %v878_v7 = vld [vmem:[%s1086_s4 + $0x20] sm:$0xff]   ;;  %681 = vmatprep.mubr.msk.bf16.mxu1 %vm140_vm0, %v757_v6  ;;  %v888_v8 = vld [vmem:[%s1086_s4 + $0x28] sm:$0xff]   ;;  %v926_v13 = vsel %vm153_vm1, %v751_v12, 0  ;;  %v758_v16 = vld [vmem:[%s1087_s0 + $0x14] ss:$8 sps:$4 sm:$0xff]  }
   0x5   :  { %v915_v11 = vld [vmem:[%s1086_s4 + $0x40] sm:$0xff]   ;;  %v761_v17 = vld [vmem:[%s1088_s1 + $0x14] ss:$8 sps:$4 sm:$0xff]   ;;  %v760_v18 = vld [vmem:[%s1087_s0 + $0x10] ss:$8 sps:$4 sm:$0xff]  }
   0x6   :  { %160 = vmatpush1.bf16.msra.mxu0 %v844_v2  ;;  %276 = vmatpush1.bf16.msra.mxu1 %v844_v2  ;;  %v752_v14 = vld [vmem:[%s1087_s0] ss:$8 sps:$4 sm:$0xff]   ;;  %v763_v19 = vld [vmem:[%s1088_s1 + $0x10] ss:$8 sps:$4 sm:$0xff]   ;;  %v764_v20 = vld [vmem:[%s1087_s0 + $0x24] ss:$8 sps:$4 sm:$0xff]  }
   0x7   :  { %161 = vmatprep.subr.bf16.mxu0 %v796_v0  ;;  %277 = vmatprep.subr.bf16.mxu1 %v796_v0  ;;  %v755_v15 = vld [vmem:[%s1088_s1] ss:$8 sps:$4 sm:$0xff]   ;;  %v767_v21 = vld [vmem:[%s1088_s1 + $0x24] ss:$8 sps:$4 sm:$0xff]   ;;  %v49_v24 = vld [vmem:[%s1087_s0 + $0x30] sm:$0xff] }
   0x8   :  { %v766_v22 = vld [vmem:[%s1087_s0 + $0x20] ss:$8 sps:$4 sm:$0xff]   ;;  %v227_v25 = vld [vmem:[%s1088_s1 + $0x30] sm:$0xff]  ;;  %v658_v26 = vcombine.high %v49_v24, %v49_v24  ;;  %v657_v28 = vcombine.low %v49_v24, %v49_v24  ;;  %v776_v30 = vld [vmem:[%s1089_s2 + $0x4] ss:$8 sps:$4 sm:$0xff]  }
   0x9   :  { %v769_v23 = vld [vmem:[%s1088_s1 + $0x20] ss:$8 sps:$4 sm:$0xff]   ;;  %v680_v27 = vcombine.high %v227_v25, %v227_v25  ;;  %v679_v29 = vcombine.low %v227_v25, %v227_v25  ;;  %v779_v31 = vld [vmem:[%s1090_s3 + $0x4] ss:$8 sps:$4 sm:$0xff]   ;;  %v780_v34 = vld [vmem:[%s1089_s2 + $0x14] ss:$8 sps:$4 sm:$0xff]  }
   0xa   :  { %162 = vmatpush1.bf16.msra.mxu0 %v853_v3  ;;  %278 = vmatpush1.bf16.msra.mxu1 %v853_v3  ;;  %v774_v32 = vld [vmem:[%s1089_s2] ss:$8 sps:$4 sm:$0xff]   ;;  %v782_v35 = vld [vmem:[%s1090_s3 + $0x14] ss:$8 sps:$4 sm:$0xff]   ;;  %v784_v36 = vld [vmem:[%s1089_s2 + $0x10] ss:$8 sps:$4 sm:$0xff]  }
   0xb   :  { %163 = vmatprep.subr.bf16.mxu0 %v796_v0  ;;  %279 = vmatprep.subr.bf16.mxu1 %v796_v0  ;;  %v777_v33 = vld [vmem:[%s1090_s3] ss:$8 sps:$4 sm:$0xff]   ;;  %v785_v37 = vld [vmem:[%s1090_s3 + $0x10] ss:$8 sps:$4 sm:$0xff]   ;;  %v786_v38 = vld [vmem:[%s1089_s2 + $0x24] ss:$8 sps:$4 sm:$0xff]  }
   0xc   :  { %v788_v39 = vld [vmem:[%s1090_s3 + $0x24] ss:$8 sps:$4 sm:$0xff]   ;;  %v350_v40 = vld [vmem:[%s1089_s2 + $0x30] sm:$0xff]  ;;  %v790_v42 = vld [vmem:[%s1089_s2 + $0x20] ss:$8 sps:$4 sm:$0xff]  }
   0xd   :  { %v473_v41 = vld [vmem:[%s1090_s3 + $0x30] sm:$0xff]  ;;  %v791_v43 = vld [vmem:[%s1090_s3 + $0x20] ss:$8 sps:$4 sm:$0xff]   ;;  %v692_v44 = vcombine.high %v350_v40, %v350_v40  ;;  %v691_v46 = vcombine.low %v350_v40, %v350_v40 }
   0xe   :  { %164 = vmatpush1.bf16.msra.mxu0 %v862_v4  ;;  %280 = vmatpush1.bf16.msra.mxu1 %v862_v4  ;;  %v704_v45 = vcombine.high %v473_v41, %v473_v41  ;;  %v703_v47 = vcombine.low %v473_v41, %v473_v41 }
   0xf   :  { %165 = vmatprep.subr.bf16.mxu0 %v796_v0  ;;  %281 = vmatprep.subr.bf16.mxu1 %v796_v0 }
  0x12   :  { %166 = vmatpush1.bf16.msra.mxu0 %v878_v7  ;;  %282 = vmatpush1.bf16.msra.mxu1 %v878_v7 }
  0x13   :  { %167 = vmatprep.subr.bf16.mxu0 %v796_v0  ;;  %283 = vmatprep.subr.bf16.mxu1 %v796_v0 }
  0x16   :  { %168 = vmatpush1.bf16.msra.mxu0 %v888_v8  ;;  %284 = vmatpush1.bf16.msra.mxu1 %v888_v8 }
  0x17   :  { %169 = vmatprep.subr.bf16.mxu0 %v796_v0  ;;  %285 = vmatprep.subr.bf16.mxu1 %v796_v0 }
  0x1a   :  { %170 = vmatpush1.bf16.msra.mxu0 %v897_v9  ;;  %286 = vmatpush1.bf16.msra.mxu1 %v897_v9 }
  0x1b   :  { %171 = vmatprep.subr.bf16.mxu0 %v796_v0  ;;  %287 = vmatprep.subr.bf16.mxu1 %v796_v0 }
  0x1e   :  { %172 = vmatpush1.bf16.msra.mxu0 %v906_v10  ;;  %288 = vmatpush1.bf16.msra.mxu1 %v906_v10 }
  0x1f   :  { %173 = vmatprep.subr.bf16.mxu0 %v796_v0  ;;  %289 = vmatprep.subr.bf16.mxu1 %v796_v0 }
  0x22   :  { %174 = vmatpush1.bf16.msra.mxu0 %v915_v11  ;;  %290 = vmatpush1.bf16.msra.mxu1 %v915_v11 }
  0x23   :  { %175 = vmatprep.subr.bf16.mxu0 %v796_v0  ;;  %291 = vmatprep.subr.bf16.mxu1 %v796_v0 }
  0x26   :  { %176 = vmatpush1.bf16.msra.mxu0 %v926_v13  ;;  %292 = vmatpush1.bf16.msra.mxu1 %v926_v13 }
  0x27   :  { %396 = vmatprep.subr.bf16.mxu0 %v796_v0  ;;  %519 = vmatprep.subr.bf16.mxu1 %v796_v0 }
  0x29   :  { %190 = vmatmul.mubr.bf16.vlgmr.msra.gmra.mrb[0].mxu0 %v752_v14  ;;  %306 = vmatmul.mubr.bf16.vlgmr.msra.gmra.mrb[0].mxu1 %v755_v15 }
  0x2a   :  { %397 = vmatpush1.bf16.msra.mxu0 %v837_v1  ;;  %520 = vmatpush1.bf16.msra.mxu1 %v837_v1 }
  0x2b   :  { %398 = vmatprep.subr.bf16.mxu0 %v796_v0  ;;  %521 = vmatprep.subr.bf16.mxu1 %v796_v0 }
  0x2c   :  { %670 = vmatprep.mubr.msk.bf16.mxu0 %vm140_vm0, %v758_v16  ;;  %682 = vmatprep.mubr.msk.bf16.mxu1 %vm140_vm0, %v761_v17 }
  0x2e   :  { %399 = vmatpush1.bf16.msra.mxu0 %v844_v2  ;;  %522 = vmatpush1.bf16.msra.mxu1 %v844_v2 }
  0x2f   :  { %400 = vmatprep.subr.bf16.mxu0 %v796_v0  ;;  %523 = vmatprep.subr.bf16.mxu1 %v796_v0 }
  0x31   :  { %198 = vmatmul.mubr.bf16.gmra.mrb[4].mxu0 %v760_v18  ;;  %314 = vmatmul.mubr.bf16.gmra.mrb[4].mxu1 %v763_v19 }
  0x32   :  { %401 = vmatpush1.bf16.msra.mxu0 %v853_v3  ;;  %524 = vmatpush1.bf16.msra.mxu1 %v853_v3 }
  0x33   :  { %402 = vmatprep.subr.bf16.mxu0 %v796_v0  ;;  %525 = vmatprep.subr.bf16.mxu1 %v796_v0 }
  0x34   :  { %671 = vmatprep.mubr.msk.bf16.mxu0 %vm140_vm0, %v764_v20  ;;  %683 = vmatprep.mubr.msk.bf16.mxu1 %vm140_vm0, %v767_v21 }
  0x36   :  { %403 = vmatpush1.bf16.msra.mxu0 %v862_v4  ;;  %526 = vmatpush1.bf16.msra.mxu1 %v862_v4 }
  0x37   :  { %404 = vmatprep.subr.bf16.mxu0 %v796_v0  ;;  %527 = vmatprep.subr.bf16.mxu1 %v796_v0 }
  0x39   :  { %206 = vmatmul.mubr.bf16.gmra.mrb[8].mxu0 %v766_v22  ;;  %322 = vmatmul.mubr.bf16.gmra.mrb[8].mxu1 %v769_v23 }
  0x3a   :  { %405 = vmatpush1.bf16.msra.mxu0 %v878_v7  ;;  %528 = vmatpush1.bf16.msra.mxu1 %v878_v7 }
  0x3b   :  { %406 = vmatprep.subr.bf16.mxu0 %v796_v0  ;;  %529 = vmatprep.subr.bf16.mxu1 %v796_v0 }
  0x3c   :  { %672 = vmatprep.mubr.msk.bf16.mxu0 %vm140_vm0, %v658_v26  ;;  %684 = vmatprep.mubr.msk.bf16.mxu1 %vm140_vm0, %v680_v27 }
  0x3e   :  { %407 = vmatpush1.bf16.msra.mxu0 %v888_v8  ;;  %530 = vmatpush1.bf16.msra.mxu1 %v888_v8 }
  0x3f   :  { %408 = vmatprep.subr.bf16.mxu0 %v796_v0  ;;  %531 = vmatprep.subr.bf16.mxu1 %v796_v0 }
  0x41   :  { %214 = vmatmul.mubr.bf16.gmra.mrb[12].mxu0 %v657_v28  ;;  %330 = vmatmul.mubr.bf16.gmra.mrb[12].mxu1 %v679_v29  ;;  %v709_v28 = vld [vmem:[%s1091_s5] ss:$0 sm:$0xff] }
  0x42   :  { %409 = vmatpush1.bf16.msra.mxu0 %v897_v9  ;;  %532 = vmatpush1.bf16.msra.mxu1 %v897_v9 }
  0x43   :  { %410 = vmatprep.subr.bf16.mxu0 %v796_v0  ;;  %533 = vmatprep.subr.bf16.mxu1 %v796_v0 }
  0x44   :  { %693 = vmatprep.mubr.msk.bf16.mxu0 %vm140_vm0, %v776_v30  ;;  %705 = vmatprep.mubr.msk.bf16.mxu1 %vm140_vm0, %v779_v31 }
  0x46   :  { %411 = vmatpush1.bf16.msra.mxu0 %v906_v10  ;;  %534 = vmatpush1.bf16.msra.mxu1 %v906_v10 }
  0x47   :  { %412 = vmatprep.subr.bf16.mxu0 %v796_v0  ;;  %535 = vmatprep.subr.bf16.mxu1 %v796_v0 }
  0x4a   :  { %413 = vmatpush1.bf16.msra.mxu0 %v915_v11  ;;  %536 = vmatpush1.bf16.msra.mxu1 %v915_v11 }
  0x4b   :  { %414 = vmatprep.subr.bf16.mxu0 %v796_v0  ;;  %537 = vmatprep.subr.bf16.mxu1 %v796_v0 }
  0x4e   :  { %415 = vmatpush1.bf16.msra.mxu0 %v926_v13  ;;  %538 = vmatpush1.bf16.msra.mxu1 %v926_v13 }
  0x51   :  { %429 = vmatmul.mubr.bf16.vlgmr.msra.gmra.mrb[16].mxu0 %v774_v32  ;;  %552 = vmatmul.mubr.bf16.vlgmr.msra.gmra.mrb[16].mxu1 %v777_v33 }
  0x52   :  { %694 = vmatprep.mubr.msk.bf16.mxu0 %vm140_vm0, %v780_v34  ;;  %706 = vmatprep.mubr.msk.bf16.mxu1 %vm140_vm0, %v782_v35 }
  0x59   :  { %437 = vmatmul.mubr.bf16.gmra.mrb[20].mxu0 %v784_v36  ;;  %560 = vmatmul.mubr.bf16.gmra.mrb[20].mxu1 %v785_v37 }
  0x5a   :  { %695 = vmatprep.mubr.msk.bf16.mxu0 %vm140_vm0, %v786_v38  ;;  %707 = vmatprep.mubr.msk.bf16.mxu1 %vm140_vm0, %v788_v39 }
  0x61   :  { %445 = vmatmul.mubr.bf16.gmra.mrb[24].mxu0 %v790_v42  ;;  %568 = vmatmul.mubr.bf16.gmra.mrb[24].mxu1 %v791_v43 }
  0x62   :  { %696 = vmatprep.mubr.msk.bf16.mxu0 %vm140_vm0, %v692_v44  ;;  %708 = vmatprep.mubr.msk.bf16.mxu1 %vm140_vm0, %v704_v45 }
  0x69   :  { %453 = vmatmul.mubr.bf16.gmra.mrb[28].mxu0 %v691_v46  ;;  %576 = vmatmul.mubr.bf16.gmra.mrb[28].mxu1 %v703_v47 }
  0xfc   :  { %v191_v48 = vpop.f32.mrb[0].mxu0  ;;  %v307_v49 = vpop.f32.mrb[0].mxu1 }
  0xfd   :  { %v337_v50 = vmax.f32 %v191_v48, %v307_v49  ;;  %v193_v51 = vpop.f32.mrb[1].mxu0  ;;  %v309_v52 = vpop.f32.mrb[1].mxu1 }
  0xfe   :  { %v194_v53 = vpop.f32.mrb[2].mxu0  ;;  %v310_v54 = vpop.f32.mrb[2].mxu1 }
  0xff   :  { %v338_v55 = vmax.f32 %v194_v53, %v310_v54  ;;  %v196_v56 = vpop.f32.mrb[3].mxu0  ;;  %v312_v57 = vpop.f32.mrb[3].mxu1 }
 0x104   :  { %v199_v58 = vpop.f32.mrb[4].mxu0  ;;  %v315_v59 = vpop.f32.mrb[4].mxu1 }
 0x105   :  { %v201_v60 = vpop.f32.mrb[5].mxu0  ;;  %v339_v61 = vmax.f32 %v199_v58, %v315_v59  ;;  %v317_v62 = vpop.f32.mrb[5].mxu1 }
 0x106   :  { %v202_v63 = vpop.f32.mrb[6].mxu0  ;;  %v318_v0 = vpop.f32.mrb[6].mxu1 }
 0x107   :  { %v204_v1 = vpop.f32.mrb[7].mxu0  ;;  %v340_v2 = vmax.f32 %v202_v63, %v318_v0  ;;  %v320_v3 = vpop.f32.mrb[7].mxu1 }
 0x10c   :  { %v207_v4 = vpop.f32.mrb[8].mxu0  ;;  %v323_v5 = vpop.f32.mrb[8].mxu1 }
 0x10d   :  { %v209_v6 = vpop.f32.mrb[9].mxu0  ;;  %v341_v7 = vmax.f32 %v207_v4, %v323_v5  ;;  %v325_v8 = vpop.f32.mrb[9].mxu1 }
 0x10e   :  { %v210_v9 = vpop.f32.mrb[10].mxu0  ;;  %v326_v10 = vpop.f32.mrb[10].mxu1 }
 0x10f   :  { %v212_v11 = vpop.f32.mrb[11].mxu0  ;;  %v342_v12 = vmax.f32 %v210_v9, %v326_v10  ;;  %v328_v13 = vpop.f32.mrb[11].mxu1 }
 0x114   :  { %v1062_v14 = vpop.f32.mrb[12].mxu0  ;;  %v1064_v15 = vpop.f32.mrb[12].mxu1 }
 0x115   :  { %v217_v16 = vpop.f32.mrb[13].mxu0  ;;  %v343_v17 = vmax.f32 %v1062_v14, %v1064_v15  ;;  %v333_v18 = vpop.f32.mrb[13].mxu1 }
 0x116   :  { %v218_v19 = vpop.f32.mrb[14].mxu0  ;;  %v334_v20 = vpop.f32.mrb[14].mxu1 }
 0x117   :  { %v219_v21 = vpop.f32.mrb[15].mxu0  ;;  %v335_v22 = vpop.f32.mrb[15].mxu1 }
 0x124   :  { %v430_v23 = vpop.f32.mrb[16].mxu0  ;;  %v553_v24 = vpop.f32.mrb[16].mxu1 }
 0x125   :  { %v460_v25 = vmax.f32 %v337_v50, %v430_v23  ;;  %v432_v26 = vpop.f32.mrb[17].mxu0  ;;  %v555_v27 = vpop.f32.mrb[17].mxu1 }
 0x126   :  { %v433_v29 = vpop.f32.mrb[18].mxu0  ;;  %v556_v30 = vpop.f32.mrb[18].mxu1 }
 0x127   :  { %v583_v31 = vmax.f32 %v460_v25, %v553_v24  ;;  %v461_v32 = vmax.f32 %v338_v55, %v433_v29  ;;  %v435_v33 = vpop.f32.mrb[19].mxu0  ;;  %v558_v34 = vpop.f32.mrb[19].mxu1 }
 0x129   :  { %v597_v35 = vadd.f32 %v709_v28, %v583_v31  ;;  %v584_v36 = vmax.f32 %v461_v32, %v556_v30 }
 0x12b   :  { %v598_v37 = vadd.f32 %v709_v28, %v584_v36  ;;  %v604_v40 = vmax.f32 %v597_v35, 0.0 }
 0x12c   :  { %v438_v38 = vpop.f32.mrb[20].mxu0  ;;  %v561_v39 = vpop.f32.mrb[20].mxu1 }
 0x12d   :  { %v605_v41 = vmax.f32 %v598_v37, 0.0  ;;  %v462_v42 = vmax.f32 %v339_v61, %v438_v38  ;;  %v440_v43 = vpop.f32.mrb[21].mxu0  ;;  %v563_v44 = vpop.f32.mrb[21].mxu1 }
 0x12e   :  { %v441_v45 = vpop.f32.mrb[22].mxu0  ;;  %v564_v46 = vpop.f32.mrb[22].mxu1 }
 0x12f   :  { %v727_v47 = vpack.c.bf16 %v605_v41, %v604_v40  ;;  %v585_v48 = vmax.f32 %v462_v42, %v561_v39  ;;  %v463_v49 = vmax.f32 %v340_v2, %v441_v45  ;;  %v443_v50 = vpop.f32.mrb[23].mxu0  ;;  %v566_v51 = vpop.f32.mrb[23].mxu1 }
 0x131   :  { %728 = vst [vmem:[%s1092_s6] sm:$0xff] %v727_v47   ;;  %v599_v52 = vadd.f32 %v709_v28, %v585_v48  ;;  %v586_v53 = vmax.f32 %v463_v49, %v564_v46 }
 0x133   :  { %v600_v54 = vadd.f32 %v709_v28, %v586_v53  ;;  %v606_v57 = vmax.f32 %v599_v52, 0.0 }
 0x134   :  { %v446_v55 = vpop.f32.mrb[24].mxu0  ;;  %v569_v56 = vpop.f32.mrb[24].mxu1 }
 0x135   :  { %v607_v58 = vmax.f32 %v600_v54, 0.0  ;;  %v464_v59 = vmax.f32 %v341_v7, %v446_v55  ;;  %v448_v60 = vpop.f32.mrb[25].mxu0  ;;  %v571_v61 = vpop.f32.mrb[25].mxu1 }
 0x136   :  { %v449_v62 = vpop.f32.mrb[26].mxu0  ;;  %v572_v63 = vpop.f32.mrb[26].mxu1 }
 0x137   :  { %v732_v0 = vpack.c.bf16 %v607_v58, %v606_v57  ;;  %v587_v1 = vmax.f32 %v464_v59, %v569_v56  ;;  %v465_v2 = vmax.f32 %v342_v12, %v449_v62  ;;  %v451_v3 = vpop.f32.mrb[27].mxu0  ;;  %v574_v4 = vpop.f32.mrb[27].mxu1 }
 0x139   :  { %739 = vst [vmem:[%s1092_s6 + $0x8] sm:$0xff] %v732_v0   ;;  %v601_v5 = vadd.f32 %v709_v28, %v587_v1  ;;  %v588_v6 = vmax.f32 %v465_v2, %v572_v63 }
 0x13b   :  { %v602_v8 = vadd.f32 %v709_v28, %v588_v6  ;;  %v608_v11 = vmax.f32 %v601_v5, 0.0 }
 0x13c   :  { %v454_v9 = vpop.f32.mrb[28].mxu0  ;;  %v577_v10 = vpop.f32.mrb[28].mxu1 }
 0x13d   :  { %v609_v7 = vmax.f32 %v602_v8, 0.0  ;;  %v466_v13 = vmax.f32 %v343_v17, %v454_v9  ;;  %v456_v16 = vpop.f32.mrb[29].mxu0  ;;  %v579_v18 = vpop.f32.mrb[29].mxu1 }
 0x13e   :  { %v457_v12 = vpop.f32.mrb[30].mxu0  ;;  %v580_v19 = vpop.f32.mrb[30].mxu1 }
 0x13f   :  { %v737_v20 = vpack.c.bf16 %v609_v7, %v608_v11  ;;  %v589_v21 = vmax.f32 %v466_v13, %v577_v10  ;;  %v458_v22 = vpop.f32.mrb[31].mxu0  ;;  %v581_v23 = vpop.f32.mrb[31].mxu1 }
 0x141   :  { %740 = vst [vmem:[%s1092_s6 + $0x10] sm:$0xff] %v737_v20   ;;  %v603_v24 = vadd.f32 %v709_v28, %v589_v21 }
 0x143   :  { %v610_v25 = vmax.f32 %v603_v24, 0.0 }
 0x145   :  { %v723_v26 = vpack.c.bf16 %v610_v25, %v610_v25 }
 0x147   :  { %646 = vst [vmem:[%s1092_s6 + $0x18] sm:$0xf] %v723_v26 }

// kernel: net_forward.5
= control target key start
LH: loop header
LB: loop body
LE: loop exit
PB: predicated region body
PF: predicated region fallthrough
CT: control target
= control target key end

     0   :  { %v741_v0 = vmov 0   ;;  %vm249_vm0 = vcmask 130048   ;;  %v742_v32 = vmov 0.0   ;;  %vm743_vm1 = vmmov 0   ;;  %s952_s1 = inlined_call_operand.vmem [shape: bf16[400,128], index: 1, kind: input, shape index: {}]   ;;  %s953_s0 = inlined_call_operand.vmem [shape: bf16[8,400], index: 0, kind: input, shape index: {}]   ;;  %s954_s3 = inlined_call_operand.vmem [shape: bf16[128,128], index: 3, kind: input, shape index: {}]   ;;  %s955_s5 = inlined_call_operand.vmem [shape: bf16[128,128], index: 5, kind: input, shape index: {}]   ;;  %s956_s2 = inlined_call_operand.vmem [shape: f32[1,128], index: 2, kind: input, shape index: {}]   ;;  %s957_s4 = inlined_call_operand.vmem [shape: f32[1,128], index: 4, kind: input, shape index: {}]   ;;  %s958_s6 = inlined_call_operand.vmem [shape: f32[1,128], index: 6, kind: input, shape index: {}]   ;;  %s959_s7 = inlined_call_operand.vmem [shape: f32[8,128], index: 7, kind: output, shape index: {}]  }
   0x1   :  { %293 = vmatprep.subr.bf16.mxu1 %v741_v0  ;;  %v696_v1 = vld [vmem:[%s952_s1 + $0x40] sm:$0xff]   ;;  %v699_v4 = vld [vmem:[%s952_s1 + $0x48] sm:$0xff]   ;;  %v702_v7 = vld [vmem:[%s952_s1 + $0x50] sm:$0xff]  }
   0x2   :  { %v697_v2 = vld [vmem:[%s952_s1 + $0x80] sm:$0xff]   ;;  %613 = vmatprep.subr.bf16.mxu0 %v696_v1  ;;  %v700_v5 = vld [vmem:[%s952_s1 + $0x88] sm:$0xff]   ;;  %v703_v8 = vld [vmem:[%s952_s1 + $0x90] sm:$0xff]  }
   0x3   :  { %v698_v3 = vld [vmem:[%s952_s1] sm:$0xff]   ;;  %294 = vmatpush1.bf16.msra.mxu1 %v697_v2  ;;  %v701_v6 = vld [vmem:[%s952_s1 + $0x8] sm:$0xff]   ;;  %v704_v9 = vld [vmem:[%s952_s1 + $0x10] sm:$0xff]  }
   0x4   :  { %614 = vmatpush3.bf16.msra.mxu0 %v698_v3  ;;  %295 = vmatprep.subr.bf16.mxu1 %v741_v0  ;;  %v705_v10 = vld [vmem:[%s952_s1 + $0x58] sm:$0xff]   ;;  %v708_v13 = vld [vmem:[%s952_s1 + $0x60] sm:$0xff]   ;;  %v711_v16 = vld [vmem:[%s952_s1 + $0x68] sm:$0xff]  }
   0x5   :  { %615 = vmatprep.subr.bf16.mxu0 %v699_v4  ;;  %v706_v11 = vld [vmem:[%s952_s1 + $0x98] sm:$0xff]   ;;  %v709_v14 = vld [vmem:[%s952_s1 + $0xa0] sm:$0xff]   ;;  %v712_v17 = vld [vmem:[%s952_s1 + $0xa8] sm:$0xff]  }
   0x6   :  { %v707_v12 = vld [vmem:[%s952_s1 + $0x18] sm:$0xff]   ;;  %v710_v15 = vld [vmem:[%s952_s1 + $0x20] sm:$0xff]   ;;  %v713_v18 = vld [vmem:[%s952_s1 + $0x28] sm:$0xff]  }
   0x7   :  { %296 = vmatpush1.bf16.msra.mxu1 %v700_v5  ;;  %v714_v19 = vld [vmem:[%s952_s1 + $0x70] sm:$0xff]   ;;  %v27_v22 = vld [vmem:[%s953_s0] sm:$0xff]  ;;  %v717_v23 = vld [vmem:[%s952_s1 + $0x78] sm:$0xff]  }
   0x8   :  { %616 = vmatpush3.bf16.msra.mxu0 %v701_v6  ;;  %297 = vmatprep.subr.bf16.mxu1 %v741_v0  ;;  %v715_v20 = vld [vmem:[%s952_s1 + $0xb0] sm:$0xff]   ;;  %v566_v24 = vcombine.high %v27_v22, %v27_v22  ;;  %v28_v25 = vld [vmem:[%s953_s0 + $0x8] sm:$0xff]  ;;  %v718_v27 = vld [vmem:[%s952_s1 + $0xb8] sm:$0xff]   ;;  %v565_v30 = vcombine.low %v27_v22, %v27_v22 }
   0x9   :  { %617 = vmatprep.subr.bf16.mxu0 %v702_v7  ;;  %v716_v21 = vld [vmem:[%s952_s1 + $0x30] sm:$0xff]   ;;  %v568_v26 = vcombine.high %v28_v25, %v28_v25  ;;  %v719_v28 = vld [vmem:[%s952_s1 + $0x38] sm:$0xff]   ;;  %v722_v29 = vld [vmem:[%s952_s1 + $0xc0] sm:$0xff]   ;;  %v567_v33 = vcombine.low %v28_v25, %v28_v25 }
   0xa   :  { %285 = vmatprep.mubr.bf16.mxu0 %v566_v24  ;;  %v725_v31 = vld [vmem:[%s954_s3] sm:$0xff]   ;;  %v726_v34 = vld [vmem:[%s954_s3 + $0x8] sm:$0xff]   ;;  %v727_v35 = vld [vmem:[%s954_s3 + $0x10] sm:$0xff]  }
   0xb   :  { %298 = vmatpush1.bf16.msra.mxu1 %v703_v8  ;;  %594 = vmatprep.mubr.msk.bf16.mxu1 %vm249_vm0, %v568_v26  ;;  %v728_v36 = vld [vmem:[%s954_s3 + $0x18] sm:$0xff]   ;;  %v729_v37 = vld [vmem:[%s954_s3 + $0x20] sm:$0xff]   ;;  %v730_v38 = vld [vmem:[%s954_s3 + $0x28] sm:$0xff]  }
   0xc   :  { %618 = vmatpush3.bf16.msra.mxu0 %v704_v9  ;;  %299 = vmatprep.subr.bf16.mxu1 %v741_v0  ;;  %v731_v39 = vld [vmem:[%s954_s3 + $0x30] sm:$0xff]   ;;  %v732_v40 = vld [vmem:[%s954_s3 + $0x38] sm:$0xff]   ;;  %v733_v41 = vld [vmem:[%s955_s5] sm:$0xff]  }
   0xd   :  { %619 = vmatprep.subr.bf16.mxu0 %v705_v10  ;;  %v734_v42 = vld [vmem:[%s955_s5 + $0x8] sm:$0xff]   ;;  %v735_v43 = vld [vmem:[%s955_s5 + $0x10] sm:$0xff]   ;;  %v736_v44 = vld [vmem:[%s955_s5 + $0x18] sm:$0xff]  }
   0xe   :  { %v737_v45 = vld [vmem:[%s955_s5 + $0x20] sm:$0xff]   ;;  %v738_v46 = vld [vmem:[%s955_s5 + $0x28] sm:$0xff]   ;;  %v739_v61 = vld [vmem:[%s955_s5 + $0x30] sm:$0xff]  }
   0xf   :  { %300 = vmatpush1.bf16.msra.mxu1 %v706_v11  ;;  %v564_v49 = vld [vmem:[%s956_s2] ss:$0 sm:$0xff]  ;;  %v740_v62 = vld [vmem:[%s955_s5 + $0x38] sm:$0xff]  }
  0x10   :  { %620 = vmatpush3.bf16.msra.mxu0 %v707_v12  ;;  %301 = vmatprep.subr.bf16.mxu1 %v741_v0  ;;  %v595_v63 = vld [vmem:[%s957_s4] ss:$0 sm:$0xff] }
  0x11   :  { %621 = vmatprep.subr.bf16.mxu0 %v708_v13  ;;  %v604_v7 = vld [vmem:[%s958_s6] ss:$0 sm:$0xff] }
  0x13   :  { %302 = vmatpush1.bf16.msra.mxu1 %v709_v14 }
  0x14   :  { %622 = vmatpush3.bf16.msra.mxu0 %v710_v15  ;;  %303 = vmatprep.subr.bf16.mxu1 %v741_v0 }
  0x15   :  { %623 = vmatprep.subr.bf16.mxu0 %v711_v16 }
  0x17   :  { %304 = vmatpush1.bf16.msra.mxu1 %v712_v17 }
  0x18   :  { %624 = vmatpush3.bf16.msra.mxu0 %v713_v18  ;;  %305 = vmatprep.subr.bf16.mxu1 %v741_v0 }
  0x19   :  { %625 = vmatprep.subr.bf16.mxu0 %v714_v19 }
  0x1b   :  { %306 = vmatpush1.bf16.msra.mxu1 %v715_v20 }
  0x1c   :  { %626 = vmatpush3.bf16.msra.mxu0 %v716_v21  ;;  %307 = vmatprep.subr.bf16.mxu1 %v741_v0 }
  0x1d   :  { %627 = vmatprep.subr.bf16.mxu0 %v717_v23 }
  0x1f   :  { %308 = vmatpush1.bf16.msra.mxu1 %v718_v27 }
  0x20   :  { %628 = vmatpush3.bf16.msra.mxu0 %v719_v28  ;;  %309 = vmatprep.subr.bf16.mxu1 %v741_v0 }
  0x21   :  { %653 = vmatprep.subr.bf16.mxu0 %v742_v32 }
  0x23   :  { %286 = vmatmul.mubr.bf16.vlgmr.msra.gmra.mrb[0].mxu0 %v565_v30  ;;  %310 = vmatpush1.bf16.msra.mxu1 %v722_v29 }
  0x24   :  { %654 = vmatpush3.bf16.msra.mxu0 %v725_v31  ;;  %673 = vmatprep.subr.bf16.mxu1 %v742_v32 }
  0x25   :  { %655 = vmatprep.subr.bf16.mxu0 %v742_v32  ;;  %669 = vmatprep.mubr.msk.bf16.mxu0 %vm743_vm1, %v742_v32 }
  0x26   :  { %326 = vmatmul.mubr.bf16.vlgmr.msra.gmra.mrb[0].mxu1 %v567_v33 }
  0x27   :  { %689 = vmatprep.mubr.msk.bf16.mxu1 %vm743_vm1, %v742_v32  ;;  %674 = vmatpush3.bf16.msra.mxu1 %v733_v41 }
  0x28   :  { %656 = vmatpush3.bf16.msra.mxu0 %v726_v34  ;;  %675 = vmatprep.subr.bf16.mxu1 %v742_v32 }
  0x29   :  { %657 = vmatprep.subr.bf16.mxu0 %v742_v32 }
  0x2b   :  { %676 = vmatpush3.bf16.msra.mxu1 %v734_v42 }
  0x2c   :  { %658 = vmatpush3.bf16.msra.mxu0 %v727_v35  ;;  %677 = vmatprep.subr.bf16.mxu1 %v742_v32 }
  0x2d   :  { %659 = vmatprep.subr.bf16.mxu0 %v742_v32 }
  0x2f   :  { %678 = vmatpush3.bf16.msra.mxu1 %v735_v43 }
  0x30   :  { %660 = vmatpush3.bf16.msra.mxu0 %v728_v36  ;;  %679 = vmatprep.subr.bf16.mxu1 %v742_v32 }
  0x31   :  { %661 = vmatprep.subr.bf16.mxu0 %v742_v32 }
  0x33   :  { %680 = vmatpush3.bf16.msra.mxu1 %v736_v44 }
  0x34   :  { %662 = vmatpush3.bf16.msra.mxu0 %v729_v37  ;;  %681 = vmatprep.subr.bf16.mxu1 %v742_v32 }
  0x35   :  { %663 = vmatprep.subr.bf16.mxu0 %v742_v32 }
  0x37   :  { %682 = vmatpush3.bf16.msra.mxu1 %v737_v45 }
  0x38   :  { %664 = vmatpush3.bf16.msra.mxu0 %v730_v38  ;;  %683 = vmatprep.subr.bf16.mxu1 %v742_v32 }
  0x39   :  { %665 = vmatprep.subr.bf16.mxu0 %v742_v32 }
  0x3b   :  { %684 = vmatpush3.bf16.msra.mxu1 %v738_v46 }
  0x3c   :  { %666 = vmatpush3.bf16.msra.mxu0 %v731_v39  ;;  %685 = vmatprep.subr.bf16.mxu1 %v742_v32 }
  0x3d   :  { %667 = vmatprep.subr.bf16.mxu0 %v742_v32 }
  0x3f   :  { %686 = vmatpush3.bf16.msra.mxu1 %v739_v61 }
  0x40   :  { %668 = vmatpush3.bf16.msra.mxu0 %v732_v40  ;;  %687 = vmatprep.subr.bf16.mxu1 %v742_v32 }
  0x43   :  { %688 = vmatpush3.bf16.msra.mxu1 %v740_v62 }
  0xf6   :  { %v629_v47 = vpop.f32.mrb[0].mxu0 }
  0xf7   :  { %v630_v48 = vpop.f32.mrb[1].mxu0 }
  0xf8   :  { %v631_v50 = vadd.f32 %v630_v48, %v629_v47  ;;  %v632_v51 = vpop.f32.mrb[2].mxu0 }
  0xf9   :  { %v633_v52 = vpop.f32.mrb[3].mxu0  ;;  %v327_v53 = vpop.f32.mrb[0].mxu1 }
  0xfa   :  { %v288_v54 = vadd.f32 %v631_v50, %v564_v49  ;;  %v329_v55 = vpop.f32.mrb[1].mxu1 }
  0xfb   :  { %v330_v56 = vpop.f32.mrb[2].mxu1 }
  0xfc   :  { %v328_v57 = vadd.f32 %v327_v53, %v288_v54  ;;  %v331_v58 = vpop.f32.mrb[3].mxu1 }
  0xfe   :  { %v333_v59 = vmax.f32 %v328_v57, 0.0 }
 0x100   :  { %v334_v60 = vpack.c.bf16 %v333_v59, %v333_v59 }
 0x102   :  { %670 = vmatmul.mubr.bf16.vlgmr.msra.gmra.mrb[4].mxu0 %v334_v60 }
 0x1d5   :  { %v440_v0 = vpop.f32.mrb[4].mxu0 }
 0x1d6   :  { %v441_v1 = vadd.f32 %v595_v63, %v440_v0  ;;  %v671_v2 = vpop.f32.mrb[5].mxu0 }
 0x1d7   :  { %v443_v3 = vpop.f32.mrb[6].mxu0 }
 0x1d8   :  { %v446_v4 = vmax.f32 %v441_v1, 0.0  ;;  %v672_v5 = vpop.f32.mrb[7].mxu0 }
 0x1da   :  { %v447_v6 = vpack.c.bf16 %v446_v4, %v446_v4 }
 0x1dc   :  { %690 = vmatmul.mubr.bf16.vlgmr.msra.gmra.mrb[4].mxu1 %v447_v6 }
 0x2af   :  { %v553_v8 = vpop.f32.mrb[4].mxu1 }
 0x2b0   :  { %v554_v9 = vadd.f32 %v604_v7, %v553_v8  ;;  %v691_v10 = vpop.f32.mrb[5].mxu1 }
 0x2b1   :  { %v556_v11 = vpop.f32.mrb[6].mxu1 }
 0x2b2   :  { %559 = vst [vmem:[%s959_s7] sm:$0xff] %v554_v9  ;;  %v692_v12 = vpop.f32.mrb[7].mxu1 }

</bundles_post_ra>
